<compile_context>
chip_gen: v5e
topology: v5e:2x2
jax: 0.10.0
libtpu: 0.0.40
codegen_flags: <defaults>
</compile_context>

<pallas_src>
import jax
import jax.numpy as jnp
from jax.experimental import pallas as pl
from jax.experimental.pallas import tpu as pltpu


_LANE = 1024                    # lane-dense last dim (multiple of 128)
_MIN_PALLAS_BYTES = 512 * 1024  # below this, plain JAX multiply (XLA fuses it)


def _sublane_pack(dtype) -> int:
    # Minimum second-to-last tiling multiple: 8 (4-byte), 16 (2-byte), 32 (1-byte).
    itemsize = jnp.dtype(dtype).itemsize
    return max(8, 32 // max(1, itemsize))


def _round_up(x: int, m: int) -> int:
    return ((x + m - 1) // m) * m


def _tpu_profile() -> str:
    """Coarse generation detection: v5e (small scoped VMEM, no bf16 VALU) vs rest."""
    try:
        kind = jax.devices()[0].device_kind.lower()
    except Exception:
        return "default"
    if "v5 lite" in kind or "v5lite" in kind or "v5e" in kind:
        return "v5e"
    return "default"


def _neg_scale_2d(g2, neg_alpha_f32, native_mul, block_bytes, vmem_limit):
    """out = neg_alpha * g2 for a 2-D lane-dense slab, via a row-tiled Pallas kernel."""
    rows, lane = g2.shape
    itemsize = jnp.dtype(g2.dtype).itemsize
    pack = _sublane_pack(g2.dtype)

    # Row tile: as big as the per-block byte target allows (pack-aligned), but
    # split into >=2 grid steps whenever possible so dual-TC chips (v7x) can
    # shard the "parallel" row axis across both cores.
    cap = max(pack, (block_bytes // max(1, lane * itemsize)) // pack * pack)
    if rows <= pack:
        tm = rows                                          # single full-dim block
    else:
        tm = min(cap, _round_up(pl.cdiv(rows, 2), pack))   # pack-multiple, <= rows
    grid = (pl.cdiv(rows, tm),)

    def kernel(scale_ref, g_ref, o_ref):
        s = scale_ref[0, 0]            # -alpha, f32, from SMEM (runtime scalar)
        g = g_ref[...]
        if native_mul:
            # v6e/v7x: native packed-dtype multiply (halves vreg pressure).
            o_ref[...] = g * s.astype(g.dtype)
        else:
            # v5e / f32: multiply in f32, downcast on store.
            o_ref[...] = (g.astype(jnp.float32) * s).astype(o_ref.dtype)

    n = rows * lane
    cost = pl.CostEstimate(flops=n, transcendentals=0, bytes_accessed=2 * n * itemsize)
    scale = jnp.reshape(neg_alpha_f32.astype(jnp.float32), (1, 1))

    return pl.pallas_call(
        kernel,
        out_shape=jax.ShapeDtypeStruct(g2.shape, g2.dtype),
        grid=grid,
        in_specs=[
            pl.BlockSpec(memory_space=pltpu.MemorySpace.SMEM),   # -alpha scalar
            pl.BlockSpec((tm, lane), lambda i: (i, 0)),
        ],
        out_specs=pl.BlockSpec((tm, lane), lambda i: (i, 0)),
        input_output_aliases={1: 0},   # rewrite the gradient slab in place if donatable
        compiler_params=pltpu.CompilerParams(
            dimension_semantics=("parallel",),
            vmem_limit_bytes=vmem_limit),
        cost_estimate=cost,
    )(scale, g2)


def _neg_scale_pallas(g, alpha_f32):
    """Computes -alpha * g (HBM-streaming elementwise)."""
    orig_shape = g.shape
    n = g.size
    if n == 0:
        return g

    neg_alpha = -alpha_f32
    itemsize = jnp.dtype(g.dtype).itemsize

    # Tiny gradients: a standalone pallas_call is pure overhead (full HBM
    # read+write + grid-step cost); let XLA fuse a scalar multiply instead.
    if n * itemsize < _MIN_PALLAS_BYTES:
        return (g.astype(jnp.float32) * neg_alpha).astype(g.dtype)

    profile = _tpu_profile()
    block_bytes = (2 << 20) if profile == "v5e" else (4 << 20)
    vmem_limit = None if profile == "v5e" else (32 << 20)
    native_mul = (profile != "v5e") and g.dtype != jnp.float32

    pack = _sublane_pack(g.dtype)
    flat = g.reshape(-1)
    last = orig_shape[-1] if len(orig_shape) >= 1 else n

    if n % _LANE == 0:
        # No-pad fast path #1: collapse to a lane-dense (rows, 1024) slab.
        g2 = flat.reshape(n // _LANE, _LANE)
        pad = 0
    elif (len(orig_shape) >= 2 and last % 128 == 0
          and last * itemsize * pack <= (8 << 20)):
        # No-pad fast path #2: tile the collapsed (leading, last_dim) view.
        g2 = flat.reshape(n // last, last)
        pad = 0
    else:
        # Ragged fallback: pad to a multiple of pack*1024, slice afterwards.
        pad_unit = pack * _LANE
        padded_n = _round_up(n, pad_unit)
        pad = padded_n - n
        flat = jnp.pad(flat, (0, pad))
        g2 = flat.reshape(padded_n // _LANE, _LANE)

    out = _neg_scale_2d(g2, neg_alpha, native_mul, block_bytes, vmem_limit)

    out_flat = out.reshape(-1)
    if pad:
        out_flat = out_flat[:n]
    return out_flat.reshape(orig_shape)


# --- custom VJP: identity forward, -alpha * grad backward ---------------------

@jax.custom_vjp
def _grl_core(x, alpha_f32):
    return x


def _grl_fwd(x, alpha_f32):
    return x, alpha_f32


def _grl_bwd(alpha_f32, g):
    return _neg_scale_pallas(g, alpha_f32), jnp.zeros_like(alpha_f32)


_grl_core.defvjp(_grl_fwd, _grl_bwd)


def gradient_reversal(x, alpha=1.0):
    """Identity forward; backward multiplies the incoming gradient by -alpha.

    alpha may be a Python number OR a traced/annealed jnp scalar — it is a
    runtime operand, so changing alpha does not retrace or recompile the kernel.
    """
    alpha_f32 = jnp.asarray(alpha, dtype=jnp.float32)
    return _grl_core(x, alpha_f32)


class GradientReversalLayer:
    """JAX/Pallas port of the PyTorch GradientReversalLayer."""

    def __init__(self, alpha: float = 1.0):
        self.alpha = alpha
        # TODO(synk): PyTorch's _device_tracker Parameter / .device property is
        # host-side bookkeeping with no TPU-compute equivalent; kept as a dummy.
        self._device_tracker = jnp.asarray(0.0, dtype=jnp.float32)

    def __call__(self, x):
        if not isinstance(x, (jnp.ndarray, jax.Array)):
            raise TypeError("Input must be a jax.Array.")
        return gradient_reversal(x, self.alpha)


if __name__ == "__main__":
    key = jax.random.PRNGKey(0)
    k0, k1, k2 = jax.random.split(key, 3)

    layer = GradientReversalLayer(alpha=1.5)

    # 1) Small NCHW input (as the PyTorch module would see).  Forward must be
    #    identity; the tiny gradient takes the fused plain-JAX fallback path.
    x_small = jax.random.normal(k0, (2, 4, 16, 16), dtype=jnp.float32)
    y = jax.block_until_ready(layer(x_small))
    assert y.shape == x_small.shape and y.dtype == x_small.dtype
    assert jnp.allclose(y, x_small), "forward must be identity"

    g_small = jax.block_until_ready(jax.grad(lambda v: jnp.sum(layer(v) * 2.0))(x_small))
    assert jnp.allclose(g_small, -1.5 * 2.0 * jnp.ones_like(x_small)), \
        "gradient must be reversed (small / fallback path)"

    # 2) Larger f32 gradient (4 MiB) — exercises the Pallas kernel no-pad fast path.
    x_big = jax.random.normal(k1, (8, 128, 1024), dtype=jnp.float32)
    g_big = jax.block_until_ready(jax.grad(lambda v: jnp.sum(layer(v) * 3.0))(x_big))
    assert g_big.shape == x_big.shape and g_big.dtype == x_big.dtype
    assert jnp.allclose(g_big, -1.5 * 3.0 * jnp.ones_like(x_big)), \
        "gradient must be reversed (f32 Pallas path)"

    # 3) bf16 gradient — native-dtype multiply on v6e/v7x, f32 path on v5e.
    x_bf = x_big.astype(jnp.bfloat16)
    g_bf = jax.block_until_ready(jax.grad(lambda v: jnp.sum(layer(v) * 2.0))(x_bf))
    assert g_bf.dtype == jnp.bfloat16
    assert jnp.allclose(g_bf.astype(jnp.float32),
                        -1.5 * 2.0 * jnp.ones_like(x_big)), \
        "gradient must be reversed (bf16 Pallas path)"

    # 4) Ragged shape (~2 MiB, not a multiple of 1024 / 128) — pad+slice path.
    x_rag = jax.random.normal(k2, (1031, 517), dtype=jnp.float32)
    g_rag = jax.block_until_ready(jax.grad(lambda v: jnp.sum(layer(v) * 2.0))(x_rag))
    assert g_rag.shape == x_rag.shape
    assert jnp.allclose(g_rag, -1.5 * 2.0 * jnp.ones_like(x_rag)), \
        "gradient must be reversed (ragged / padded path)"

    # 5) Annealed (traced) alpha reuses the same compiled kernel.
    g_ann = jax.block_until_ready(
        jax.grad(lambda v: jnp.sum(gradient_reversal(v, jnp.float32(0.25)) * 2.0))(x_big))
    assert jnp.allclose(g_ann, -0.25 * 2.0 * jnp.ones_like(x_big)), \
        "gradient must be reversed (runtime alpha)"

    print("KERNEL_OK")
</pallas_src>

<mosaic_0001>
module attributes {stable_mosaic.version = 11 : i64} {
  func.func @kernel(%arg0: i32, %arg1: memref<1x1xf32, #tpu.memory_space<smem>>, %arg2: memref<512x1024xf32, #tpu.memory_space<vmem>>, %arg3: memref<512x1024xf32, #tpu.memory_space<vmem>>) attributes {dimension_semantics = [#tpu.dimension_semantics<parallel>], iteration_bounds = array<i64: 2>, scalar_prefetch = 0 : i64, scratch_operands = 0 : i64, tpu.core_type = #tpu.core_type<tc>, window_params = [{transform_indices = @transform_0, window_bounds = array<i64: 1, 1>}, {transform_indices = @transform_1, window_bounds = array<i64: 512, 1024>}, {transform_indices = @transform_2, window_bounds = array<i64: 512, 1024>}]} {
    %c0 = arith.constant 0 : index
    %c0_0 = arith.constant 0 : index
    %0 = memref.load %arg1[%c0, %c0_0] : memref<1x1xf32, #tpu.memory_space<smem>>
    %c0_1 = arith.constant 0 : index
    %c0_2 = arith.constant 0 : index
    %1 = vector.load %arg2[%c0_1, %c0_2] : memref<512x1024xf32, #tpu.memory_space<vmem>>, vector<512x1024xf32>
    %2 = vector.broadcast %0 : f32 to vector<512x1024xf32>
    %3 = arith.mulf %1, %2 : vector<512x1024xf32>
    %c0_3 = arith.constant 0 : index
    %c0_4 = arith.constant 0 : index
    %4 = vector.load %arg3[%c0_3, %c0_4] : memref<512x1024xf32, #tpu.memory_space<vmem>>, vector<512x1024xf32>
    tpu.vector_store %arg3[%c0_3, %c0_4], %3 {strides = array<i32>} : memref<512x1024xf32, #tpu.memory_space<vmem>>, vector<512x1024xf32>,
    return
  }
  func.func @transform_0(%arg0: i32) -> (i32, i32) {
    %c0_i32 = arith.constant 0 : i32
    %c0_i32_0 = arith.constant 0 : i32
    %c0_i32_1 = arith.constant 0 : i32
    return %c0_i32, %c0_i32_0 : i32, i32
  }
  func.func @transform_1(%arg0: i32) -> (i32, i32) {
    %c0_i32 = arith.constant 0 : i32
    %c0_i32_0 = arith.constant 0 : i32
    return %arg0, %c0_i32 : i32, i32
  }
  func.func @transform_2(%arg0: i32) -> (i32, i32) {
    %c0_i32 = arith.constant 0 : i32
    %c0_i32_0 = arith.constant 0 : i32
    return %arg0, %c0_i32 : i32, i32
  }
}

</mosaic_0001>

<bundles_post_ra>
// kernel: tpu_custom_call.1
= control target key start
LH: loop header
LB: loop body
LE: loop exit
PB: predicated region body
PF: predicated region fallthrough
CT: control target
= control target key end

     0   :  { %s3656_s0 = inlined_call_operand.<no memory space> [shape: f32[1,1], index: 0, kind: input, shape index: {}]   ;;  %s3657_s1 = inlined_call_operand.hbm [shape: f32[1024,1024], index: 1, kind: input, shape index: {}, may-alias: {1,2}]   ;;  %s3658_s2 = inlined_call_operand.hbm [shape: f32[1024,1024], index: 2, kind: output, shape index: {}, may-alias: {1,2}]  }
   0x1   :  { %7 = sst [smem:[#allocation2]] %s3656_s0 }
   0x2   :  { %8 = vsyncpa [#allocation4], 0 }
   0x3   :  { %10 = vsyncpa [#allocation4 + $0x1], 0 }
   0x4   :  { %11 = vsyncpa [#allocation5], 0 }
   0x5   :  { %13 = vsyncpa [#allocation5 + $0x1], 0  ;;  %s1986_s11 = smov 0   ;;  %s1988_s12 = smov 0  }
   0x6   :  { %s1990_s13 = smov 0   ;;  %s1992_s14 = smov 0  }
   0x7 LB: > { %s2007_s0 = sadd.s32 4294967295, %s1962_s14   ;;  %s1796_s15 = sadd.s32 4294967294, %s1962_s14   ;;  %s1962_s14 = sphi %s1992_s14, %s3668_s14   ;;  %s1958_s13 = sphi %s1990_s13, %s3667_s13   ;;  %s1954_s12 = sphi %s1988_s12, %s3666_s12   ;;  %s1950_s11 = sphi %s1986_s11, %s3665_s11  }
   0x8   : > { %s2011_s16 = sadd.s32 1, %s1962_s14   ;;  %s47_s17 = sadd.s32 1, %s1958_s13 }
   0x9   : > { %s44_s18 = ssub.s32 %s1962_s14, %s2011_s16  ;;  %p54_p0 = scmp.ne.s32.totalorder %s1958_s13, %s1954_s12 }
   0xa   : > { %p45_p1 = scmp.eq.s32.totalorder %s44_s18, 0  ;;  %p55_p2 = scmp.eq.s32.totalorder %s1962_s14, 0 }
   0xb   : > { %p60_p3 = scmp.ne.s32.totalorder %s1954_s12, %s1950_s11  ;;  %p61_p4 = scmp.eq.s32.totalorder %s2007_s0, 0 }
   0xc   : > { %s2023_s19 = scalar_select %p45_p1, %s1958_s13, %s47_s17  }
   0xd   : > { %p2025_p5 = por %p55_p2, %p54_p0  ;;  %p2029_p6 = por %p61_p4, %p60_p3 }
   0xe   : > { %p84_p7 = scmp.eq.s32.totalorder %s2007_s0, 1  ;;  %p90_p8 = scmp.eq.s32.totalorder %s1796_s15, 1 }
   0xf   : > { %p1828_p10 = scmp.lt.s32.totalorder %s1962_s14, 2  ;;  %s113_s24 = sand.u32 1, %s1958_s13  }
  0x10   : > { %p2036_p11 = por %p84_p7, %p54_p0  ;;  %p2040_p12 = por %p90_p8, %p60_p3 }
  0x11   : > { %s1813_s25 = sshll.u32 %s1962_s14, 12  ;;  %s1799_s26 = sshll.u32 %s113_s24, 12 }
  0x12   : > { %s123_s29 = scalar_lea.hbm %s3657_s1, %s1813_s25  ;;  %s117_s3 = scalar_lea.vmem [#allocation3], %s1799_s26 }
  0x13   : > { %s124_s30 = sshll.u32 %s123_s29, 4  ;;  %s126_s4 = sshll.u32 %s117_s3, 4  ;;  %s125_s30 = int_to_ptr.hbm [resolvable:$true] %s124_s30  ;;  %s127_s4 = int_to_ptr.vmem [resolvable:$true] %s126_s4 }
  0x14   : > { %p2051_p13 = pnand %p1828_p10, %p2025_p5  ;;  %p1803_p0 = scmp.ge.s32.totalorder %s1962_s14, 1 }
  0x15   : > { %p134_p1 = scmp.lt.s32.totalorder %s1962_s14, 3  ;;  %s114_s6 = scalar_lea.sflag [#allocation4], %s113_s24 }
  0x16   : > { %s1866_s7 = sshra.s32 %s125_s30, 4  ;;  %p1870_p3 = pneg %p2051_p13  ;;  %s1867_s7 = int_to_ptr.hbm [resolvable:$true] %s1866_s7 }
  0x17   : > { %s1868_s8 = scalar_lea.hbm %s1867_s7, 4096  ;;  %s1873_s15 = scalar_lea.hbm %s3657_s1, 8192 }
  0x18   : > { %p1869_p2 = scmp.ne.s32.totalorder %s1867_s7, %s1868_s8  ;;  %p1874_p5 = scmp.lt.s32.totalorder %s1867_s7, %s3657_s1 }
  0x19   : > { %p1875_p8 = scmp.lt.s32.totalorder %s1873_s15, %s1868_s8 }
  0x1a   : > { %p1871_p4 = pnand %p1870_p3, %p1869_p2 }
  0x1b   : > { %p1876_p10 = por %p1875_p8, %p1874_p5 }
  0x1c   : > { %p1872_p7 = pneg %p1871_p4 }
  0x1e   : > { %p1877_p9 = pnand %p1876_p10, %p1872_p7 }
  0x20   : > { %1880 = shalt.err (!%p1877_p9)
}
  0x21   : > { %s1964_s20 = smov 1024   ;;  %s1965_s24 = smov 64  }
  0x22   : > { %1823 = dma.hbm_to_vmem [thread:$0]  (!%p2051_p13), %s125_s30, 65536, %s127_s4, %s114_s6, %s1964_s20, %s1964_s20, %s1965_s24  }
  0x23   : > { %p135_p2 = pnand %p1803_p0, %p134_p1 }
  0x24   : > { %s2072_s25 = sand.u32 (!%p135_p2), 1, %s1954_s12  }
  0x25   : > { %138 = sbr.rel (%p135_p2) target bundleno = 567 (0x237), region = 28  ;;  %s1804_s26 = sshll.u32 (!%p135_p2), %s2072_s25, 12 }
  0x26   : > { %s141_s27 = scalar_lea.sflag (!%p135_p2), [#allocation4], %s2072_s25  ;;  %s2076_s28 = scalar_lea.vmem (!%p135_p2), [#allocation3], %s1804_s26 }
  0x2a   : > { %1941 = dma.done.wait (%p2029_p6), %s141_s27, 65536  }
  0x2b   : > { %1943 = vsyncadd (%p2029_p6), %s141_s27, 4294901760  ;;  %s168_s29 = sld [smem:[#allocation2]]  ;;  %v169_v0 = vld [vmem:[%s2076_s28] sm:$0xff]  ;;  %v170_v2 = vld [vmem:[%s2076_s28 + $0x8] sm:$0xff]  ;;  %s2095_s21 = scalar_lea.vmem [#allocation6], %s1804_s26 }
  0x2c   : > { %v171_v3 = vld [vmem:[%s2076_s28 + $0x10] sm:$0xff]  ;;  %v172_v7 = vld [vmem:[%s2076_s28 + $0x18] sm:$0xff]  ;;  %v173_v8 = vld [vmem:[%s2076_s28 + $0x20] sm:$0xff]  ;;  %s1815_s30 = sshll.u32 %s2007_s0, 12  ;;  %s1720_s5 = sshll.u32 %s2095_s21, 4  ;;  %s1721_s5 = int_to_ptr.vmem [resolvable:$true] %s1720_s5 }
  0x2d   : > { %v174_v9 = vld [vmem:[%s2076_s28 + $0x28] sm:$0xff]  ;;  %v175_v11 = vld [vmem:[%s2076_s28 + $0x30] sm:$0xff]  ;;  %v176_v13 = vld [vmem:[%s2076_s28 + $0x38] sm:$0xff]  ;;  %s1719_s0 = scalar_lea.hbm %s3658_s2, %s1815_s30  ;;  %s1707_s7 = scalar_lea.sflag [#allocation5], %s2072_s25 }
  0x2e   : > { %v177_v15 = vld [vmem:[%s2076_s28 + $0x40] sm:$0xff]  ;;  %v178_v17 = vld [vmem:[%s2076_s28 + $0x48] sm:$0xff]  ;;  %v179_v19 = vld [vmem:[%s2076_s28 + $0x50] sm:$0xff]  ;;  %s1722_s6 = sshll.u32 %s1719_s0, 4  ;;  %s1916_s17 = scalar_lea.hbm %s3658_s2, 8192  ;;  %s1723_s6 = int_to_ptr.hbm [resolvable:$true] %s1722_s6 }
  0x2f   : > { %v180_v21 = vld [vmem:[%s2076_s28 + $0x58] sm:$0xff]  ;;  %v181_v23 = vld [vmem:[%s2076_s28 + $0x60] sm:$0xff]  ;;  %v182_v25 = vld [vmem:[%s2076_s28 + $0x68] sm:$0xff]  ;;  %s1910_s8 = sshra.s32 %s1723_s6, 4  ;;  %s1911_s8 = int_to_ptr.hbm [resolvable:$true] %s1910_s8 }
  0x30   : > { %v183_v27 = vld [vmem:[%s2076_s28 + $0x70] sm:$0xff]  ;;  %v184_v29 = vld [vmem:[%s2076_s28 + $0x78] sm:$0xff]  ;;  %v185_v31 = vld [vmem:[%s2076_s28 + $0x80] sm:$0xff]  ;;  %s1912_s9 = scalar_lea.hbm %s1911_s8, 4096  ;;  %p1917_p0 = scmp.lt.s32.totalorder %s1911_s8, %s3658_s2 }
  0x31   : > { %v2083_v1 = vstv %s168_s29  ;;  %v186_v33 = vld [vmem:[%s2076_s28 + $0x88] sm:$0xff]  ;;  %v187_v35 = vld [vmem:[%s2076_s28 + $0x90] sm:$0xff]  ;;  %v188_v37 = vld [vmem:[%s2076_s28 + $0x98] sm:$0xff]  ;;  %p1913_p6 = scmp.ne.s32.totalorder %s1911_s8, %s1912_s9  ;;  %p1918_p1 = scmp.lt.s32.totalorder %s1916_s17, %s1912_s9 }
  0x32   : > { %v682_v4 = vmul.f32 %v2083_v1, %v169_v0  ;;  %v683_v5 = vmul.f32 %v2083_v1, %v170_v2  ;;  %v684_v6 = vmul.f32 %v2083_v1, %v171_v3  ;;  %v685_v10 = vmul.f32 %v2083_v1, %v172_v7  ;;  %v189_v39 = vld [vmem:[%s2076_s28 + $0xa0] sm:$0xff]  ;;  %v190_v41 = vld [vmem:[%s2076_s28 + $0xa8] sm:$0xff]  ;;  %v191_v43 = vld [vmem:[%s2076_s28 + $0xb0] sm:$0xff] }
  0x33   : > { %v686_v12 = vmul.f32 %v2083_v1, %v173_v8  ;;  %v687_v14 = vmul.f32 %v2083_v1, %v174_v9  ;;  %v688_v16 = vmul.f32 %v2083_v1, %v175_v11  ;;  %v689_v18 = vmul.f32 %v2083_v1, %v176_v13  ;;  %v192_v45 = vld [vmem:[%s2076_s28 + $0xb8] sm:$0xff]  ;;  %v193_v47 = vld [vmem:[%s2076_s28 + $0xc0] sm:$0xff]  ;;  %v194_v49 = vld [vmem:[%s2076_s28 + $0xc8] sm:$0xff]  ;;  %p1914_p9 = pnand %p1913_p6, %p2036_p11  ;;  %p1919_p3 = por %p1918_p1, %p1917_p0 }
  0x34   : > { %1194 = vst [vmem:[%s2095_s21] sm:$0xff] %v682_v4  ;;  %v690_v20 = vmul.f32 %v2083_v1, %v177_v15  ;;  %v691_v22 = vmul.f32 %v2083_v1, %v178_v17  ;;  %v692_v24 = vmul.f32 %v2083_v1, %v179_v19  ;;  %v693_v26 = vmul.f32 %v2083_v1, %v180_v21  ;;  %v195_v51 = vld [vmem:[%s2076_s28 + $0xd0] sm:$0xff]  ;;  %v196_v53 = vld [vmem:[%s2076_s28 + $0xd8] sm:$0xff]  ;;  %v197_v55 = vld [vmem:[%s2076_s28 + $0xe0] sm:$0xff] }
  0x35   : > { %1195 = vst [vmem:[%s2095_s21 + $0x8] sm:$0xff] %v683_v5  ;;  %v694_v28 = vmul.f32 %v2083_v1, %v181_v23  ;;  %v695_v30 = vmul.f32 %v2083_v1, %v182_v25  ;;  %v696_v32 = vmul.f32 %v2083_v1, %v183_v27  ;;  %v697_v34 = vmul.f32 %v2083_v1, %v184_v29  ;;  %v198_v57 = vld [vmem:[%s2076_s28 + $0xe8] sm:$0xff]  ;;  %v199_v59 = vld [vmem:[%s2076_s28 + $0xf0] sm:$0xff]  ;;  %v200_v61 = vld [vmem:[%s2076_s28 + $0xf8] sm:$0xff]  ;;  %p1915_p13 = pneg %p1914_p9 }
  0x36   : > { %1196 = vst [vmem:[%s2095_s21 + $0x10] sm:$0xff] %v684_v6  ;;  %v698_v36 = vmul.f32 %v2083_v1, %v185_v31  ;;  %v699_v38 = vmul.f32 %v2083_v1, %v186_v33  ;;  %v700_v40 = vmul.f32 %v2083_v1, %v187_v35  ;;  %v701_v42 = vmul.f32 %v2083_v1, %v188_v37  ;;  %v201_v63 = vld [vmem:[%s2076_s28 + $0x100] sm:$0xff]  ;;  %v202_v2 = vld [vmem:[%s2076_s28 + $0x108] sm:$0xff]  ;;  %v203_v4 = vld [vmem:[%s2076_s28 + $0x110] sm:$0xff] }
  0x37   : > { %1197 = vst [vmem:[%s2095_s21 + $0x18] sm:$0xff] %v685_v10  ;;  %v702_v44 = vmul.f32 %v2083_v1, %v189_v39  ;;  %v703_v46 = vmul.f32 %v2083_v1, %v190_v41  ;;  %v704_v48 = vmul.f32 %v2083_v1, %v191_v43  ;;  %v705_v50 = vmul.f32 %v2083_v1, %v192_v45  ;;  %v204_v6 = vld [vmem:[%s2076_s28 + $0x118] sm:$0xff]  ;;  %v205_v8 = vld [vmem:[%s2076_s28 + $0x120] sm:$0xff]  ;;  %v206_v10 = vld [vmem:[%s2076_s28 + $0x128] sm:$0xff]  ;;  %p1920_p4 = pnand %p1919_p3, %p1915_p13 }
  0x38   : > { %1198 = vst [vmem:[%s2095_s21 + $0x20] sm:$0xff] %v686_v12  ;;  %v706_v52 = vmul.f32 %v2083_v1, %v193_v47  ;;  %v707_v54 = vmul.f32 %v2083_v1, %v194_v49  ;;  %v708_v56 = vmul.f32 %v2083_v1, %v195_v51  ;;  %v709_v58 = vmul.f32 %v2083_v1, %v196_v53  ;;  %v207_v12 = vld [vmem:[%s2076_s28 + $0x130] sm:$0xff] }
  0x39   : > { %1199 = vst [vmem:[%s2095_s21 + $0x28] sm:$0xff] %v687_v14  ;;  %v710_v60 = vmul.f32 %v2083_v1, %v197_v55  ;;  %v711_v62 = vmul.f32 %v2083_v1, %v198_v57  ;;  %v712_v0 = vmul.f32 %v2083_v1, %v199_v59  ;;  %v713_v3 = vmul.f32 %v2083_v1, %v200_v61  ;;  %v208_v14 = vld [vmem:[%s2076_s28 + $0x138] sm:$0xff] }
  0x3a   : > { %1200 = vst [vmem:[%s2095_s21 + $0x30] sm:$0xff] %v688_v16  ;;  %v714_v5 = vmul.f32 %v2083_v1, %v201_v63  ;;  %v715_v7 = vmul.f32 %v2083_v1, %v202_v2  ;;  %v716_v9 = vmul.f32 %v2083_v1, %v203_v4  ;;  %v717_v11 = vmul.f32 %v2083_v1, %v204_v6  ;;  %v209_v16 = vld [vmem:[%s2076_s28 + $0x140] sm:$0xff] }
  0x3b   : > { %1201 = vst [vmem:[%s2095_s21 + $0x38] sm:$0xff] %v689_v18  ;;  %v718_v13 = vmul.f32 %v2083_v1, %v205_v8  ;;  %v719_v15 = vmul.f32 %v2083_v1, %v206_v10  ;;  %v720_v17 = vmul.f32 %v2083_v1, %v207_v12  ;;  %v210_v18 = vld [vmem:[%s2076_s28 + $0x148] sm:$0xff]  ;;  %v721_v19 = vmul.f32 %v2083_v1, %v208_v14 }
  0x3c   : > { %1202 = vst [vmem:[%s2095_s21 + $0x40] sm:$0xff] %v690_v20  ;;  %v211_v20 = vld [vmem:[%s2076_s28 + $0x150] sm:$0xff]  ;;  %v722_v21 = vmul.f32 %v2083_v1, %v209_v16  ;;  %v723_v23 = vmul.f32 %v2083_v1, %v210_v18 }
  0x3d   : > { %1203 = vst [vmem:[%s2095_s21 + $0x48] sm:$0xff] %v691_v22  ;;  %v212_v22 = vld [vmem:[%s2076_s28 + $0x158] sm:$0xff]  ;;  %v724_v25 = vmul.f32 %v2083_v1, %v211_v20 }
  0x3e   : > { %1204 = vst [vmem:[%s2095_s21 + $0x50] sm:$0xff] %v692_v24  ;;  %v213_v24 = vld [vmem:[%s2076_s28 + $0x160] sm:$0xff]  ;;  %v725_v27 = vmul.f32 %v2083_v1, %v212_v22 }
  0x3f   : > { %1205 = vst [vmem:[%s2095_s21 + $0x58] sm:$0xff] %v693_v26  ;;  %v214_v26 = vld [vmem:[%s2076_s28 + $0x168] sm:$0xff]  ;;  %v726_v29 = vmul.f32 %v2083_v1, %v213_v24 }
  0x40   : > { %1206 = vst [vmem:[%s2095_s21 + $0x60] sm:$0xff] %v694_v28  ;;  %v215_v28 = vld [vmem:[%s2076_s28 + $0x170] sm:$0xff]  ;;  %v727_v31 = vmul.f32 %v2083_v1, %v214_v26 }
  0x41   : > { %1207 = vst [vmem:[%s2095_s21 + $0x68] sm:$0xff] %v695_v30  ;;  %v216_v30 = vld [vmem:[%s2076_s28 + $0x178] sm:$0xff]  ;;  %v728_v33 = vmul.f32 %v2083_v1, %v215_v28 }
  0x42   : > { %1208 = vst [vmem:[%s2095_s21 + $0x70] sm:$0xff] %v696_v32  ;;  %v217_v32 = vld [vmem:[%s2076_s28 + $0x180] sm:$0xff]  ;;  %v729_v35 = vmul.f32 %v2083_v1, %v216_v30 }
  0x43   : > { %1209 = vst [vmem:[%s2095_s21 + $0x78] sm:$0xff] %v697_v34  ;;  %v218_v34 = vld [vmem:[%s2076_s28 + $0x188] sm:$0xff]  ;;  %v730_v37 = vmul.f32 %v2083_v1, %v217_v32 }
  0x44   : > { %1210 = vst [vmem:[%s2095_s21 + $0x80] sm:$0xff] %v698_v36  ;;  %v219_v36 = vld [vmem:[%s2076_s28 + $0x190] sm:$0xff]  ;;  %v731_v39 = vmul.f32 %v2083_v1, %v218_v34 }
  0x45   : > { %1211 = vst [vmem:[%s2095_s21 + $0x88] sm:$0xff] %v699_v38  ;;  %v220_v38 = vld [vmem:[%s2076_s28 + $0x198] sm:$0xff]  ;;  %v732_v41 = vmul.f32 %v2083_v1, %v219_v36 }
  0x46   : > { %1212 = vst [vmem:[%s2095_s21 + $0x90] sm:$0xff] %v700_v40  ;;  %v221_v40 = vld [vmem:[%s2076_s28 + $0x1a0] sm:$0xff]  ;;  %v733_v43 = vmul.f32 %v2083_v1, %v220_v38 }
  0x47   : > { %1213 = vst [vmem:[%s2095_s21 + $0x98] sm:$0xff] %v701_v42  ;;  %v222_v42 = vld [vmem:[%s2076_s28 + $0x1a8] sm:$0xff]  ;;  %v734_v45 = vmul.f32 %v2083_v1, %v221_v40 }
  0x48   : > { %1214 = vst [vmem:[%s2095_s21 + $0xa0] sm:$0xff] %v702_v44  ;;  %v223_v44 = vld [vmem:[%s2076_s28 + $0x1b0] sm:$0xff]  ;;  %v735_v47 = vmul.f32 %v2083_v1, %v222_v42 }
  0x49   : > { %1215 = vst [vmem:[%s2095_s21 + $0xa8] sm:$0xff] %v703_v46  ;;  %v224_v46 = vld [vmem:[%s2076_s28 + $0x1b8] sm:$0xff]  ;;  %v736_v49 = vmul.f32 %v2083_v1, %v223_v44 }
  0x4a   : > { %1216 = vst [vmem:[%s2095_s21 + $0xb0] sm:$0xff] %v704_v48  ;;  %v225_v48 = vld [vmem:[%s2076_s28 + $0x1c0] sm:$0xff]  ;;  %v737_v51 = vmul.f32 %v2083_v1, %v224_v46 }
  0x4b   : > { %1217 = vst [vmem:[%s2095_s21 + $0xb8] sm:$0xff] %v705_v50  ;;  %v226_v50 = vld [vmem:[%s2076_s28 + $0x1c8] sm:$0xff]  ;;  %v738_v53 = vmul.f32 %v2083_v1, %v225_v48 }
  0x4c   : > { %1218 = vst [vmem:[%s2095_s21 + $0xc0] sm:$0xff] %v706_v52  ;;  %v227_v52 = vld [vmem:[%s2076_s28 + $0x1d0] sm:$0xff]  ;;  %v739_v55 = vmul.f32 %v2083_v1, %v226_v50 }
  0x4d   : > { %1219 = vst [vmem:[%s2095_s21 + $0xc8] sm:$0xff] %v707_v54  ;;  %v228_v54 = vld [vmem:[%s2076_s28 + $0x1d8] sm:$0xff]  ;;  %v740_v57 = vmul.f32 %v2083_v1, %v227_v52 }
  0x4e   : > { %1220 = vst [vmem:[%s2095_s21 + $0xd0] sm:$0xff] %v708_v56  ;;  %v229_v56 = vld [vmem:[%s2076_s28 + $0x1e0] sm:$0xff]  ;;  %v741_v59 = vmul.f32 %v2083_v1, %v228_v54 }
  0x4f   : > { %1221 = vst [vmem:[%s2095_s21 + $0xd8] sm:$0xff] %v709_v58  ;;  %v230_v58 = vld [vmem:[%s2076_s28 + $0x1e8] sm:$0xff]  ;;  %v742_v61 = vmul.f32 %v2083_v1, %v229_v56 }
  0x50   : > { %1222 = vst [vmem:[%s2095_s21 + $0xe0] sm:$0xff] %v710_v60  ;;  %v231_v60 = vld [vmem:[%s2076_s28 + $0x1f0] sm:$0xff]  ;;  %v743_v63 = vmul.f32 %v2083_v1, %v230_v58 }
  0x51   : > { %1223 = vst [vmem:[%s2095_s21 + $0xe8] sm:$0xff] %v711_v62  ;;  %v232_v62 = vld [vmem:[%s2076_s28 + $0x1f8] sm:$0xff]  ;;  %v744_v2 = vmul.f32 %v2083_v1, %v231_v60 }
  0x52   : > { %1224 = vst [vmem:[%s2095_s21 + $0xf0] sm:$0xff] %v712_v0  ;;  %v233_v0 = vld [vmem:[%s2076_s28 + $0x200] sm:$0xff]  ;;  %v745_v4 = vmul.f32 %v2083_v1, %v232_v62 }
  0x53   : > { %1225 = vst [vmem:[%s2095_s21 + $0xf8] sm:$0xff] %v713_v3  ;;  %v234_v3 = vld [vmem:[%s2076_s28 + $0x208] sm:$0xff]  ;;  %v746_v6 = vmul.f32 %v2083_v1, %v233_v0 }
  0x54   : > { %1226 = vst [vmem:[%s2095_s21 + $0x100] sm:$0xff] %v714_v5  ;;  %v235_v5 = vld [vmem:[%s2076_s28 + $0x210] sm:$0xff]  ;;  %v747_v8 = vmul.f32 %v2083_v1, %v234_v3 }
  0x55   : > { %1227 = vst [vmem:[%s2095_s21 + $0x108] sm:$0xff] %v715_v7  ;;  %v236_v7 = vld [vmem:[%s2076_s28 + $0x218] sm:$0xff]  ;;  %v748_v10 = vmul.f32 %v2083_v1, %v235_v5 }
  0x56   : > { %1228 = vst [vmem:[%s2095_s21 + $0x110] sm:$0xff] %v716_v9  ;;  %v237_v9 = vld [vmem:[%s2076_s28 + $0x220] sm:$0xff]  ;;  %v749_v12 = vmul.f32 %v2083_v1, %v236_v7 }
  0x57   : > { %1229 = vst [vmem:[%s2095_s21 + $0x118] sm:$0xff] %v717_v11  ;;  %v238_v11 = vld [vmem:[%s2076_s28 + $0x228] sm:$0xff]  ;;  %v750_v14 = vmul.f32 %v2083_v1, %v237_v9 }
  0x58   : > { %1230 = vst [vmem:[%s2095_s21 + $0x120] sm:$0xff] %v718_v13  ;;  %v239_v13 = vld [vmem:[%s2076_s28 + $0x230] sm:$0xff]  ;;  %v751_v16 = vmul.f32 %v2083_v1, %v238_v11 }
  0x59   : > { %1231 = vst [vmem:[%s2095_s21 + $0x128] sm:$0xff] %v719_v15  ;;  %v240_v15 = vld [vmem:[%s2076_s28 + $0x238] sm:$0xff]  ;;  %v752_v18 = vmul.f32 %v2083_v1, %v239_v13 }
  0x5a   : > { %1232 = vst [vmem:[%s2095_s21 + $0x130] sm:$0xff] %v720_v17  ;;  %v241_v17 = vld [vmem:[%s2076_s28 + $0x240] sm:$0xff]  ;;  %v753_v20 = vmul.f32 %v2083_v1, %v240_v15 }
  0x5b   : > { %1233 = vst [vmem:[%s2095_s21 + $0x138] sm:$0xff] %v721_v19  ;;  %v242_v19 = vld [vmem:[%s2076_s28 + $0x248] sm:$0xff]  ;;  %v754_v22 = vmul.f32 %v2083_v1, %v241_v17 }
  0x5c   : > { %1234 = vst [vmem:[%s2095_s21 + $0x140] sm:$0xff] %v722_v21  ;;  %v243_v21 = vld [vmem:[%s2076_s28 + $0x250] sm:$0xff]  ;;  %v755_v24 = vmul.f32 %v2083_v1, %v242_v19 }
  0x5d   : > { %1235 = vst [vmem:[%s2095_s21 + $0x148] sm:$0xff] %v723_v23  ;;  %v244_v23 = vld [vmem:[%s2076_s28 + $0x258] sm:$0xff]  ;;  %v756_v26 = vmul.f32 %v2083_v1, %v243_v21 }
  0x5e   : > { %1236 = vst [vmem:[%s2095_s21 + $0x150] sm:$0xff] %v724_v25  ;;  %v245_v25 = vld [vmem:[%s2076_s28 + $0x260] sm:$0xff]  ;;  %v757_v28 = vmul.f32 %v2083_v1, %v244_v23 }
  0x5f   : > { %1237 = vst [vmem:[%s2095_s21 + $0x158] sm:$0xff] %v725_v27  ;;  %v246_v27 = vld [vmem:[%s2076_s28 + $0x268] sm:$0xff]  ;;  %v758_v30 = vmul.f32 %v2083_v1, %v245_v25 }
  0x60   : > { %1238 = vst [vmem:[%s2095_s21 + $0x160] sm:$0xff] %v726_v29  ;;  %v247_v29 = vld [vmem:[%s2076_s28 + $0x270] sm:$0xff]  ;;  %v759_v32 = vmul.f32 %v2083_v1, %v246_v27 }
  0x61   : > { %1239 = vst [vmem:[%s2095_s21 + $0x168] sm:$0xff] %v727_v31  ;;  %v248_v31 = vld [vmem:[%s2076_s28 + $0x278] sm:$0xff]  ;;  %v760_v34 = vmul.f32 %v2083_v1, %v247_v29 }
  0x62   : > { %1240 = vst [vmem:[%s2095_s21 + $0x170] sm:$0xff] %v728_v33  ;;  %v249_v33 = vld [vmem:[%s2076_s28 + $0x280] sm:$0xff]  ;;  %v761_v36 = vmul.f32 %v2083_v1, %v248_v31 }
  0x63   : > { %1241 = vst [vmem:[%s2095_s21 + $0x178] sm:$0xff] %v729_v35  ;;  %v250_v35 = vld [vmem:[%s2076_s28 + $0x288] sm:$0xff]  ;;  %v762_v38 = vmul.f32 %v2083_v1, %v249_v33 }
  0x64   : > { %1242 = vst [vmem:[%s2095_s21 + $0x180] sm:$0xff] %v730_v37  ;;  %v251_v37 = vld [vmem:[%s2076_s28 + $0x290] sm:$0xff]  ;;  %v763_v40 = vmul.f32 %v2083_v1, %v250_v35 }
  0x65   : > { %1243 = vst [vmem:[%s2095_s21 + $0x188] sm:$0xff] %v731_v39  ;;  %v252_v39 = vld [vmem:[%s2076_s28 + $0x298] sm:$0xff]  ;;  %v764_v42 = vmul.f32 %v2083_v1, %v251_v37 }
  0x66   : > { %1244 = vst [vmem:[%s2095_s21 + $0x190] sm:$0xff] %v732_v41  ;;  %v253_v41 = vld [vmem:[%s2076_s28 + $0x2a0] sm:$0xff]  ;;  %v765_v44 = vmul.f32 %v2083_v1, %v252_v39 }
  0x67   : > { %1245 = vst [vmem:[%s2095_s21 + $0x198] sm:$0xff] %v733_v43  ;;  %v254_v43 = vld [vmem:[%s2076_s28 + $0x2a8] sm:$0xff]  ;;  %v766_v46 = vmul.f32 %v2083_v1, %v253_v41 }
  0x68   : > { %1246 = vst [vmem:[%s2095_s21 + $0x1a0] sm:$0xff] %v734_v45  ;;  %v255_v45 = vld [vmem:[%s2076_s28 + $0x2b0] sm:$0xff]  ;;  %v767_v48 = vmul.f32 %v2083_v1, %v254_v43 }
  0x69   : > { %1247 = vst [vmem:[%s2095_s21 + $0x1a8] sm:$0xff] %v735_v47  ;;  %v256_v47 = vld [vmem:[%s2076_s28 + $0x2b8] sm:$0xff]  ;;  %v768_v50 = vmul.f32 %v2083_v1, %v255_v45 }
  0x6a   : > { %1248 = vst [vmem:[%s2095_s21 + $0x1b0] sm:$0xff] %v736_v49  ;;  %v257_v49 = vld [vmem:[%s2076_s28 + $0x2c0] sm:$0xff]  ;;  %v769_v52 = vmul.f32 %v2083_v1, %v256_v47 }
  0x6b   : > { %1249 = vst [vmem:[%s2095_s21 + $0x1b8] sm:$0xff] %v737_v51  ;;  %v258_v51 = vld [vmem:[%s2076_s28 + $0x2c8] sm:$0xff]  ;;  %v770_v54 = vmul.f32 %v2083_v1, %v257_v49 }
  0x6c   : > { %1250 = vst [vmem:[%s2095_s21 + $0x1c0] sm:$0xff] %v738_v53  ;;  %v259_v53 = vld [vmem:[%s2076_s28 + $0x2d0] sm:$0xff]  ;;  %v771_v56 = vmul.f32 %v2083_v1, %v258_v51 }
  0x6d   : > { %1251 = vst [vmem:[%s2095_s21 + $0x1c8] sm:$0xff] %v739_v55  ;;  %v260_v55 = vld [vmem:[%s2076_s28 + $0x2d8] sm:$0xff]  ;;  %v772_v58 = vmul.f32 %v2083_v1, %v259_v53 }
  0x6e   : > { %1252 = vst [vmem:[%s2095_s21 + $0x1d0] sm:$0xff] %v740_v57  ;;  %v261_v57 = vld [vmem:[%s2076_s28 + $0x2e0] sm:$0xff]  ;;  %v773_v60 = vmul.f32 %v2083_v1, %v260_v55 }
  0x6f   : > { %1253 = vst [vmem:[%s2095_s21 + $0x1d8] sm:$0xff] %v741_v59  ;;  %v262_v59 = vld [vmem:[%s2076_s28 + $0x2e8] sm:$0xff]  ;;  %v774_v62 = vmul.f32 %v2083_v1, %v261_v57 }
  0x70   : > { %1254 = vst [vmem:[%s2095_s21 + $0x1e0] sm:$0xff] %v742_v61  ;;  %v263_v61 = vld [vmem:[%s2076_s28 + $0x2f0] sm:$0xff]  ;;  %v775_v0 = vmul.f32 %v2083_v1, %v262_v59 }
  0x71   : > { %1255 = vst [vmem:[%s2095_s21 + $0x1e8] sm:$0xff] %v743_v63  ;;  %v264_v63 = vld [vmem:[%s2076_s28 + $0x2f8] sm:$0xff]  ;;  %v776_v3 = vmul.f32 %v2083_v1, %v263_v61 }
  0x72   : > { %1256 = vst [vmem:[%s2095_s21 + $0x1f0] sm:$0xff] %v744_v2  ;;  %v265_v2 = vld [vmem:[%s2076_s28 + $0x300] sm:$0xff]  ;;  %v777_v5 = vmul.f32 %v2083_v1, %v264_v63 }
  0x73   : > { %1257 = vst [vmem:[%s2095_s21 + $0x1f8] sm:$0xff] %v745_v4  ;;  %v266_v4 = vld [vmem:[%s2076_s28 + $0x308] sm:$0xff]  ;;  %v778_v7 = vmul.f32 %v2083_v1, %v265_v2 }
  0x74   : > { %1258 = vst [vmem:[%s2095_s21 + $0x200] sm:$0xff] %v746_v6  ;;  %v267_v6 = vld [vmem:[%s2076_s28 + $0x310] sm:$0xff]  ;;  %v779_v9 = vmul.f32 %v2083_v1, %v266_v4 }
  0x75   : > { %1259 = vst [vmem:[%s2095_s21 + $0x208] sm:$0xff] %v747_v8  ;;  %v268_v8 = vld [vmem:[%s2076_s28 + $0x318] sm:$0xff]  ;;  %v780_v11 = vmul.f32 %v2083_v1, %v267_v6 }
  0x76   : > { %1260 = vst [vmem:[%s2095_s21 + $0x210] sm:$0xff] %v748_v10  ;;  %v269_v10 = vld [vmem:[%s2076_s28 + $0x320] sm:$0xff]  ;;  %v781_v13 = vmul.f32 %v2083_v1, %v268_v8 }
  0x77   : > { %1261 = vst [vmem:[%s2095_s21 + $0x218] sm:$0xff] %v749_v12  ;;  %v270_v12 = vld [vmem:[%s2076_s28 + $0x328] sm:$0xff]  ;;  %v782_v15 = vmul.f32 %v2083_v1, %v269_v10 }
  0x78   : > { %1262 = vst [vmem:[%s2095_s21 + $0x220] sm:$0xff] %v750_v14  ;;  %v271_v14 = vld [vmem:[%s2076_s28 + $0x330] sm:$0xff]  ;;  %v783_v17 = vmul.f32 %v2083_v1, %v270_v12 }
  0x79   : > { %1263 = vst [vmem:[%s2095_s21 + $0x228] sm:$0xff] %v751_v16  ;;  %v272_v16 = vld [vmem:[%s2076_s28 + $0x338] sm:$0xff]  ;;  %v784_v19 = vmul.f32 %v2083_v1, %v271_v14 }
  0x7a   : > { %1264 = vst [vmem:[%s2095_s21 + $0x230] sm:$0xff] %v752_v18  ;;  %v273_v18 = vld [vmem:[%s2076_s28 + $0x340] sm:$0xff]  ;;  %v785_v21 = vmul.f32 %v2083_v1, %v272_v16 }
  0x7b   : > { %1265 = vst [vmem:[%s2095_s21 + $0x238] sm:$0xff] %v753_v20  ;;  %v274_v20 = vld [vmem:[%s2076_s28 + $0x348] sm:$0xff]  ;;  %v786_v23 = vmul.f32 %v2083_v1, %v273_v18 }
  0x7c   : > { %1266 = vst [vmem:[%s2095_s21 + $0x240] sm:$0xff] %v754_v22  ;;  %v275_v22 = vld [vmem:[%s2076_s28 + $0x350] sm:$0xff]  ;;  %v787_v25 = vmul.f32 %v2083_v1, %v274_v20 }
  0x7d   : > { %1267 = vst [vmem:[%s2095_s21 + $0x248] sm:$0xff] %v755_v24  ;;  %v276_v24 = vld [vmem:[%s2076_s28 + $0x358] sm:$0xff]  ;;  %v788_v27 = vmul.f32 %v2083_v1, %v275_v22 }
  0x7e   : > { %1268 = vst [vmem:[%s2095_s21 + $0x250] sm:$0xff] %v756_v26  ;;  %v277_v26 = vld [vmem:[%s2076_s28 + $0x360] sm:$0xff]  ;;  %v789_v29 = vmul.f32 %v2083_v1, %v276_v24 }
  0x7f   : > { %1269 = vst [vmem:[%s2095_s21 + $0x258] sm:$0xff] %v757_v28  ;;  %v278_v28 = vld [vmem:[%s2076_s28 + $0x368] sm:$0xff]  ;;  %v790_v31 = vmul.f32 %v2083_v1, %v277_v26 }
  0x80   : > { %1270 = vst [vmem:[%s2095_s21 + $0x260] sm:$0xff] %v758_v30  ;;  %v279_v30 = vld [vmem:[%s2076_s28 + $0x370] sm:$0xff]  ;;  %v791_v33 = vmul.f32 %v2083_v1, %v278_v28 }
  0x81   : > { %1271 = vst [vmem:[%s2095_s21 + $0x268] sm:$0xff] %v759_v32  ;;  %v280_v32 = vld [vmem:[%s2076_s28 + $0x378] sm:$0xff]  ;;  %v792_v35 = vmul.f32 %v2083_v1, %v279_v30 }
  0x82   : > { %1272 = vst [vmem:[%s2095_s21 + $0x270] sm:$0xff] %v760_v34  ;;  %v281_v34 = vld [vmem:[%s2076_s28 + $0x380] sm:$0xff]  ;;  %v793_v37 = vmul.f32 %v2083_v1, %v280_v32 }
  0x83   : > { %1273 = vst [vmem:[%s2095_s21 + $0x278] sm:$0xff] %v761_v36  ;;  %v282_v36 = vld [vmem:[%s2076_s28 + $0x388] sm:$0xff]  ;;  %v794_v39 = vmul.f32 %v2083_v1, %v281_v34 }
  0x84   : > { %1274 = vst [vmem:[%s2095_s21 + $0x280] sm:$0xff] %v762_v38  ;;  %v283_v38 = vld [vmem:[%s2076_s28 + $0x390] sm:$0xff]  ;;  %v795_v41 = vmul.f32 %v2083_v1, %v282_v36 }
  0x85   : > { %1275 = vst [vmem:[%s2095_s21 + $0x288] sm:$0xff] %v763_v40  ;;  %v284_v40 = vld [vmem:[%s2076_s28 + $0x398] sm:$0xff]  ;;  %v796_v43 = vmul.f32 %v2083_v1, %v283_v38 }
  0x86   : > { %1276 = vst [vmem:[%s2095_s21 + $0x290] sm:$0xff] %v764_v42  ;;  %v285_v42 = vld [vmem:[%s2076_s28 + $0x3a0] sm:$0xff]  ;;  %v797_v45 = vmul.f32 %v2083_v1, %v284_v40 }
  0x87   : > { %1277 = vst [vmem:[%s2095_s21 + $0x298] sm:$0xff] %v765_v44  ;;  %v286_v44 = vld [vmem:[%s2076_s28 + $0x3a8] sm:$0xff]  ;;  %v798_v47 = vmul.f32 %v2083_v1, %v285_v42 }
  0x88   : > { %1278 = vst [vmem:[%s2095_s21 + $0x2a0] sm:$0xff] %v766_v46  ;;  %v287_v46 = vld [vmem:[%s2076_s28 + $0x3b0] sm:$0xff]  ;;  %v799_v49 = vmul.f32 %v2083_v1, %v286_v44 }
  0x89   : > { %1279 = vst [vmem:[%s2095_s21 + $0x2a8] sm:$0xff] %v767_v48  ;;  %v288_v48 = vld [vmem:[%s2076_s28 + $0x3b8] sm:$0xff]  ;;  %v800_v51 = vmul.f32 %v2083_v1, %v287_v46 }
  0x8a   : > { %1280 = vst [vmem:[%s2095_s21 + $0x2b0] sm:$0xff] %v768_v50  ;;  %v289_v50 = vld [vmem:[%s2076_s28 + $0x3c0] sm:$0xff]  ;;  %v801_v53 = vmul.f32 %v2083_v1, %v288_v48 }
  0x8b   : > { %1281 = vst [vmem:[%s2095_s21 + $0x2b8] sm:$0xff] %v769_v52  ;;  %v290_v52 = vld [vmem:[%s2076_s28 + $0x3c8] sm:$0xff]  ;;  %v802_v55 = vmul.f32 %v2083_v1, %v289_v50 }
  0x8c   : > { %1282 = vst [vmem:[%s2095_s21 + $0x2c0] sm:$0xff] %v770_v54  ;;  %v291_v54 = vld [vmem:[%s2076_s28 + $0x3d0] sm:$0xff]  ;;  %v803_v57 = vmul.f32 %v2083_v1, %v290_v52 }
  0x8d   : > { %1283 = vst [vmem:[%s2095_s21 + $0x2c8] sm:$0xff] %v771_v56  ;;  %v292_v56 = vld [vmem:[%s2076_s28 + $0x3d8] sm:$0xff]  ;;  %v804_v59 = vmul.f32 %v2083_v1, %v291_v54 }
  0x8e   : > { %1284 = vst [vmem:[%s2095_s21 + $0x2d0] sm:$0xff] %v772_v58  ;;  %v293_v58 = vld [vmem:[%s2076_s28 + $0x3e0] sm:$0xff]  ;;  %v805_v61 = vmul.f32 %v2083_v1, %v292_v56 }
  0x8f   : > { %1285 = vst [vmem:[%s2095_s21 + $0x2d8] sm:$0xff] %v773_v60  ;;  %v294_v60 = vld [vmem:[%s2076_s28 + $0x3e8] sm:$0xff]  ;;  %v806_v63 = vmul.f32 %v2083_v1, %v293_v58 }
  0x90   : > { %1286 = vst [vmem:[%s2095_s21 + $0x2e0] sm:$0xff] %v774_v62  ;;  %v295_v62 = vld [vmem:[%s2076_s28 + $0x3f0] sm:$0xff]  ;;  %v807_v2 = vmul.f32 %v2083_v1, %v294_v60 }
  0x91   : > { %1287 = vst [vmem:[%s2095_s21 + $0x2e8] sm:$0xff] %v775_v0  ;;  %v296_v0 = vld [vmem:[%s2076_s28 + $0x3f8] sm:$0xff]  ;;  %v808_v4 = vmul.f32 %v2083_v1, %v295_v62 }
  0x92   : > { %1288 = vst [vmem:[%s2095_s21 + $0x2f0] sm:$0xff] %v776_v3  ;;  %v297_v3 = vld [vmem:[%s2076_s28 + $0x400] sm:$0xff]  ;;  %v809_v6 = vmul.f32 %v2083_v1, %v296_v0 }
  0x93   : > { %1289 = vst [vmem:[%s2095_s21 + $0x2f8] sm:$0xff] %v777_v5  ;;  %v298_v5 = vld [vmem:[%s2076_s28 + $0x408] sm:$0xff]  ;;  %v810_v8 = vmul.f32 %v2083_v1, %v297_v3 }
  0x94   : > { %1290 = vst [vmem:[%s2095_s21 + $0x300] sm:$0xff] %v778_v7  ;;  %v299_v7 = vld [vmem:[%s2076_s28 + $0x410] sm:$0xff]  ;;  %v811_v10 = vmul.f32 %v2083_v1, %v298_v5 }
  0x95   : > { %1291 = vst [vmem:[%s2095_s21 + $0x308] sm:$0xff] %v779_v9  ;;  %v300_v9 = vld [vmem:[%s2076_s28 + $0x418] sm:$0xff]  ;;  %v812_v12 = vmul.f32 %v2083_v1, %v299_v7 }
  0x96   : > { %1292 = vst [vmem:[%s2095_s21 + $0x310] sm:$0xff] %v780_v11  ;;  %v301_v11 = vld [vmem:[%s2076_s28 + $0x420] sm:$0xff]  ;;  %v813_v14 = vmul.f32 %v2083_v1, %v300_v9 }
  0x97   : > { %1293 = vst [vmem:[%s2095_s21 + $0x318] sm:$0xff] %v781_v13  ;;  %v302_v13 = vld [vmem:[%s2076_s28 + $0x428] sm:$0xff]  ;;  %v814_v16 = vmul.f32 %v2083_v1, %v301_v11 }
  0x98   : > { %1294 = vst [vmem:[%s2095_s21 + $0x320] sm:$0xff] %v782_v15  ;;  %v303_v15 = vld [vmem:[%s2076_s28 + $0x430] sm:$0xff]  ;;  %v815_v18 = vmul.f32 %v2083_v1, %v302_v13 }
  0x99   : > { %1295 = vst [vmem:[%s2095_s21 + $0x328] sm:$0xff] %v783_v17  ;;  %v304_v17 = vld [vmem:[%s2076_s28 + $0x438] sm:$0xff]  ;;  %v816_v20 = vmul.f32 %v2083_v1, %v303_v15 }
  0x9a   : > { %1296 = vst [vmem:[%s2095_s21 + $0x330] sm:$0xff] %v784_v19  ;;  %v305_v19 = vld [vmem:[%s2076_s28 + $0x440] sm:$0xff]  ;;  %v817_v22 = vmul.f32 %v2083_v1, %v304_v17 }
  0x9b   : > { %1297 = vst [vmem:[%s2095_s21 + $0x338] sm:$0xff] %v785_v21  ;;  %v306_v21 = vld [vmem:[%s2076_s28 + $0x448] sm:$0xff]  ;;  %v818_v24 = vmul.f32 %v2083_v1, %v305_v19 }
  0x9c   : > { %1298 = vst [vmem:[%s2095_s21 + $0x340] sm:$0xff] %v786_v23  ;;  %v307_v23 = vld [vmem:[%s2076_s28 + $0x450] sm:$0xff]  ;;  %v819_v26 = vmul.f32 %v2083_v1, %v306_v21 }
  0x9d   : > { %1299 = vst [vmem:[%s2095_s21 + $0x348] sm:$0xff] %v787_v25  ;;  %v308_v25 = vld [vmem:[%s2076_s28 + $0x458] sm:$0xff]  ;;  %v820_v28 = vmul.f32 %v2083_v1, %v307_v23 }
  0x9e   : > { %1300 = vst [vmem:[%s2095_s21 + $0x350] sm:$0xff] %v788_v27  ;;  %v309_v27 = vld [vmem:[%s2076_s28 + $0x460] sm:$0xff]  ;;  %v821_v30 = vmul.f32 %v2083_v1, %v308_v25 }
  0x9f   : > { %1301 = vst [vmem:[%s2095_s21 + $0x358] sm:$0xff] %v789_v29  ;;  %v310_v29 = vld [vmem:[%s2076_s28 + $0x468] sm:$0xff]  ;;  %v822_v32 = vmul.f32 %v2083_v1, %v309_v27 }
  0xa0   : > { %1302 = vst [vmem:[%s2095_s21 + $0x360] sm:$0xff] %v790_v31  ;;  %v311_v31 = vld [vmem:[%s2076_s28 + $0x470] sm:$0xff]  ;;  %v823_v34 = vmul.f32 %v2083_v1, %v310_v29 }
  0xa1   : > { %1303 = vst [vmem:[%s2095_s21 + $0x368] sm:$0xff] %v791_v33  ;;  %v312_v33 = vld [vmem:[%s2076_s28 + $0x478] sm:$0xff]  ;;  %v824_v36 = vmul.f32 %v2083_v1, %v311_v31 }
  0xa2   : > { %1304 = vst [vmem:[%s2095_s21 + $0x370] sm:$0xff] %v792_v35  ;;  %v313_v35 = vld [vmem:[%s2076_s28 + $0x480] sm:$0xff]  ;;  %v825_v38 = vmul.f32 %v2083_v1, %v312_v33 }
  0xa3   : > { %1305 = vst [vmem:[%s2095_s21 + $0x378] sm:$0xff] %v793_v37  ;;  %v314_v37 = vld [vmem:[%s2076_s28 + $0x488] sm:$0xff]  ;;  %v826_v40 = vmul.f32 %v2083_v1, %v313_v35 }
  0xa4   : > { %1306 = vst [vmem:[%s2095_s21 + $0x380] sm:$0xff] %v794_v39  ;;  %v315_v39 = vld [vmem:[%s2076_s28 + $0x490] sm:$0xff]  ;;  %v827_v42 = vmul.f32 %v2083_v1, %v314_v37 }
  0xa5   : > { %1307 = vst [vmem:[%s2095_s21 + $0x388] sm:$0xff] %v795_v41  ;;  %v316_v41 = vld [vmem:[%s2076_s28 + $0x498] sm:$0xff]  ;;  %v828_v44 = vmul.f32 %v2083_v1, %v315_v39 }
  0xa6   : > { %1308 = vst [vmem:[%s2095_s21 + $0x390] sm:$0xff] %v796_v43  ;;  %v317_v43 = vld [vmem:[%s2076_s28 + $0x4a0] sm:$0xff]  ;;  %v829_v46 = vmul.f32 %v2083_v1, %v316_v41 }
  0xa7   : > { %1309 = vst [vmem:[%s2095_s21 + $0x398] sm:$0xff] %v797_v45  ;;  %v318_v45 = vld [vmem:[%s2076_s28 + $0x4a8] sm:$0xff]  ;;  %v830_v48 = vmul.f32 %v2083_v1, %v317_v43 }
  0xa8   : > { %1310 = vst [vmem:[%s2095_s21 + $0x3a0] sm:$0xff] %v798_v47  ;;  %v319_v47 = vld [vmem:[%s2076_s28 + $0x4b0] sm:$0xff]  ;;  %v831_v50 = vmul.f32 %v2083_v1, %v318_v45 }
  0xa9   : > { %1311 = vst [vmem:[%s2095_s21 + $0x3a8] sm:$0xff] %v799_v49  ;;  %v320_v49 = vld [vmem:[%s2076_s28 + $0x4b8] sm:$0xff]  ;;  %v832_v52 = vmul.f32 %v2083_v1, %v319_v47 }
  0xaa   : > { %1312 = vst [vmem:[%s2095_s21 + $0x3b0] sm:$0xff] %v800_v51  ;;  %v321_v51 = vld [vmem:[%s2076_s28 + $0x4c0] sm:$0xff]  ;;  %v833_v54 = vmul.f32 %v2083_v1, %v320_v49 }
  0xab   : > { %1313 = vst [vmem:[%s2095_s21 + $0x3b8] sm:$0xff] %v801_v53  ;;  %v322_v53 = vld [vmem:[%s2076_s28 + $0x4c8] sm:$0xff]  ;;  %v834_v56 = vmul.f32 %v2083_v1, %v321_v51 }
  0xac   : > { %1314 = vst [vmem:[%s2095_s21 + $0x3c0] sm:$0xff] %v802_v55  ;;  %v323_v55 = vld [vmem:[%s2076_s28 + $0x4d0] sm:$0xff]  ;;  %v835_v58 = vmul.f32 %v2083_v1, %v322_v53 }
  0xad   : > { %1315 = vst [vmem:[%s2095_s21 + $0x3c8] sm:$0xff] %v803_v57  ;;  %v324_v57 = vld [vmem:[%s2076_s28 + $0x4d8] sm:$0xff]  ;;  %v836_v60 = vmul.f32 %v2083_v1, %v323_v55 }
  0xae   : > { %1316 = vst [vmem:[%s2095_s21 + $0x3d0] sm:$0xff] %v804_v59  ;;  %v325_v59 = vld [vmem:[%s2076_s28 + $0x4e0] sm:$0xff]  ;;  %v837_v62 = vmul.f32 %v2083_v1, %v324_v57 }
  0xaf   : > { %1317 = vst [vmem:[%s2095_s21 + $0x3d8] sm:$0xff] %v805_v61  ;;  %v326_v61 = vld [vmem:[%s2076_s28 + $0x4e8] sm:$0xff]  ;;  %v838_v0 = vmul.f32 %v2083_v1, %v325_v59 }
  0xb0   : > { %1318 = vst [vmem:[%s2095_s21 + $0x3e0] sm:$0xff] %v806_v63  ;;  %v327_v63 = vld [vmem:[%s2076_s28 + $0x4f0] sm:$0xff]  ;;  %v839_v3 = vmul.f32 %v2083_v1, %v326_v61 }
  0xb1   : > { %1319 = vst [vmem:[%s2095_s21 + $0x3e8] sm:$0xff] %v807_v2  ;;  %v328_v2 = vld [vmem:[%s2076_s28 + $0x4f8] sm:$0xff]  ;;  %v840_v5 = vmul.f32 %v2083_v1, %v327_v63 }
  0xb2   : > { %1320 = vst [vmem:[%s2095_s21 + $0x3f0] sm:$0xff] %v808_v4  ;;  %v329_v4 = vld [vmem:[%s2076_s28 + $0x500] sm:$0xff]  ;;  %v841_v7 = vmul.f32 %v2083_v1, %v328_v2 }
  0xb3   : > { %1321 = vst [vmem:[%s2095_s21 + $0x3f8] sm:$0xff] %v809_v6  ;;  %v330_v6 = vld [vmem:[%s2076_s28 + $0x508] sm:$0xff]  ;;  %v842_v9 = vmul.f32 %v2083_v1, %v329_v4 }
  0xb4   : > { %1322 = vst [vmem:[%s2095_s21 + $0x400] sm:$0xff] %v810_v8  ;;  %v331_v8 = vld [vmem:[%s2076_s28 + $0x510] sm:$0xff]  ;;  %v843_v11 = vmul.f32 %v2083_v1, %v330_v6 }
  0xb5   : > { %1323 = vst [vmem:[%s2095_s21 + $0x408] sm:$0xff] %v811_v10  ;;  %v332_v10 = vld [vmem:[%s2076_s28 + $0x518] sm:$0xff]  ;;  %v844_v13 = vmul.f32 %v2083_v1, %v331_v8 }
  0xb6   : > { %1324 = vst [vmem:[%s2095_s21 + $0x410] sm:$0xff] %v812_v12  ;;  %v333_v12 = vld [vmem:[%s2076_s28 + $0x520] sm:$0xff]  ;;  %v845_v15 = vmul.f32 %v2083_v1, %v332_v10 }
  0xb7   : > { %1325 = vst [vmem:[%s2095_s21 + $0x418] sm:$0xff] %v813_v14  ;;  %v334_v14 = vld [vmem:[%s2076_s28 + $0x528] sm:$0xff]  ;;  %v846_v17 = vmul.f32 %v2083_v1, %v333_v12 }
  0xb8   : > { %1326 = vst [vmem:[%s2095_s21 + $0x420] sm:$0xff] %v814_v16  ;;  %v335_v16 = vld [vmem:[%s2076_s28 + $0x530] sm:$0xff]  ;;  %v847_v19 = vmul.f32 %v2083_v1, %v334_v14 }
  0xb9   : > { %1327 = vst [vmem:[%s2095_s21 + $0x428] sm:$0xff] %v815_v18  ;;  %v336_v18 = vld [vmem:[%s2076_s28 + $0x538] sm:$0xff]  ;;  %v848_v21 = vmul.f32 %v2083_v1, %v335_v16 }
  0xba   : > { %1328 = vst [vmem:[%s2095_s21 + $0x430] sm:$0xff] %v816_v20  ;;  %v337_v20 = vld [vmem:[%s2076_s28 + $0x540] sm:$0xff]  ;;  %v849_v23 = vmul.f32 %v2083_v1, %v336_v18 }
  0xbb   : > { %1329 = vst [vmem:[%s2095_s21 + $0x438] sm:$0xff] %v817_v22  ;;  %v338_v22 = vld [vmem:[%s2076_s28 + $0x548] sm:$0xff]  ;;  %v850_v25 = vmul.f32 %v2083_v1, %v337_v20 }
  0xbc   : > { %1330 = vst [vmem:[%s2095_s21 + $0x440] sm:$0xff] %v818_v24  ;;  %v339_v24 = vld [vmem:[%s2076_s28 + $0x550] sm:$0xff]  ;;  %v851_v27 = vmul.f32 %v2083_v1, %v338_v22 }
  0xbd   : > { %1331 = vst [vmem:[%s2095_s21 + $0x448] sm:$0xff] %v819_v26  ;;  %v340_v26 = vld [vmem:[%s2076_s28 + $0x558] sm:$0xff]  ;;  %v852_v29 = vmul.f32 %v2083_v1, %v339_v24 }
  0xbe   : > { %1332 = vst [vmem:[%s2095_s21 + $0x450] sm:$0xff] %v820_v28  ;;  %v341_v28 = vld [vmem:[%s2076_s28 + $0x560] sm:$0xff]  ;;  %v853_v31 = vmul.f32 %v2083_v1, %v340_v26 }
  0xbf   : > { %1333 = vst [vmem:[%s2095_s21 + $0x458] sm:$0xff] %v821_v30  ;;  %v342_v30 = vld [vmem:[%s2076_s28 + $0x568] sm:$0xff]  ;;  %v854_v33 = vmul.f32 %v2083_v1, %v341_v28 }
  0xc0   : > { %1334 = vst [vmem:[%s2095_s21 + $0x460] sm:$0xff] %v822_v32  ;;  %v343_v32 = vld [vmem:[%s2076_s28 + $0x570] sm:$0xff]  ;;  %v855_v35 = vmul.f32 %v2083_v1, %v342_v30 }
  0xc1   : > { %1335 = vst [vmem:[%s2095_s21 + $0x468] sm:$0xff] %v823_v34  ;;  %v344_v34 = vld [vmem:[%s2076_s28 + $0x578] sm:$0xff]  ;;  %v856_v37 = vmul.f32 %v2083_v1, %v343_v32 }
  0xc2   : > { %1336 = vst [vmem:[%s2095_s21 + $0x470] sm:$0xff] %v824_v36  ;;  %v345_v36 = vld [vmem:[%s2076_s28 + $0x580] sm:$0xff]  ;;  %v857_v39 = vmul.f32 %v2083_v1, %v344_v34 }
  0xc3   : > { %1337 = vst [vmem:[%s2095_s21 + $0x478] sm:$0xff] %v825_v38  ;;  %v346_v38 = vld [vmem:[%s2076_s28 + $0x588] sm:$0xff]  ;;  %v858_v41 = vmul.f32 %v2083_v1, %v345_v36 }
  0xc4   : > { %1338 = vst [vmem:[%s2095_s21 + $0x480] sm:$0xff] %v826_v40  ;;  %v347_v40 = vld [vmem:[%s2076_s28 + $0x590] sm:$0xff]  ;;  %v859_v43 = vmul.f32 %v2083_v1, %v346_v38 }
  0xc5   : > { %1339 = vst [vmem:[%s2095_s21 + $0x488] sm:$0xff] %v827_v42  ;;  %v348_v42 = vld [vmem:[%s2076_s28 + $0x598] sm:$0xff]  ;;  %v860_v45 = vmul.f32 %v2083_v1, %v347_v40 }
  0xc6   : > { %1340 = vst [vmem:[%s2095_s21 + $0x490] sm:$0xff] %v828_v44  ;;  %v349_v44 = vld [vmem:[%s2076_s28 + $0x5a0] sm:$0xff]  ;;  %v861_v47 = vmul.f32 %v2083_v1, %v348_v42 }
  0xc7   : > { %1341 = vst [vmem:[%s2095_s21 + $0x498] sm:$0xff] %v829_v46  ;;  %v350_v46 = vld [vmem:[%s2076_s28 + $0x5a8] sm:$0xff]  ;;  %v862_v49 = vmul.f32 %v2083_v1, %v349_v44 }
  0xc8   : > { %1342 = vst [vmem:[%s2095_s21 + $0x4a0] sm:$0xff] %v830_v48  ;;  %v351_v48 = vld [vmem:[%s2076_s28 + $0x5b0] sm:$0xff]  ;;  %v863_v51 = vmul.f32 %v2083_v1, %v350_v46 }
  0xc9   : > { %1343 = vst [vmem:[%s2095_s21 + $0x4a8] sm:$0xff] %v831_v50  ;;  %v352_v50 = vld [vmem:[%s2076_s28 + $0x5b8] sm:$0xff]  ;;  %v864_v53 = vmul.f32 %v2083_v1, %v351_v48 }
  0xca   : > { %1344 = vst [vmem:[%s2095_s21 + $0x4b0] sm:$0xff] %v832_v52  ;;  %v353_v52 = vld [vmem:[%s2076_s28 + $0x5c0] sm:$0xff]  ;;  %v865_v55 = vmul.f32 %v2083_v1, %v352_v50 }
  0xcb   : > { %1345 = vst [vmem:[%s2095_s21 + $0x4b8] sm:$0xff] %v833_v54  ;;  %v354_v54 = vld [vmem:[%s2076_s28 + $0x5c8] sm:$0xff]  ;;  %v866_v57 = vmul.f32 %v2083_v1, %v353_v52 }
  0xcc   : > { %1346 = vst [vmem:[%s2095_s21 + $0x4c0] sm:$0xff] %v834_v56  ;;  %v355_v56 = vld [vmem:[%s2076_s28 + $0x5d0] sm:$0xff]  ;;  %v867_v59 = vmul.f32 %v2083_v1, %v354_v54 }
  0xcd   : > { %1347 = vst [vmem:[%s2095_s21 + $0x4c8] sm:$0xff] %v835_v58  ;;  %v356_v58 = vld [vmem:[%s2076_s28 + $0x5d8] sm:$0xff]  ;;  %v868_v61 = vmul.f32 %v2083_v1, %v355_v56 }
  0xce   : > { %1348 = vst [vmem:[%s2095_s21 + $0x4d0] sm:$0xff] %v836_v60  ;;  %v357_v60 = vld [vmem:[%s2076_s28 + $0x5e0] sm:$0xff]  ;;  %v869_v63 = vmul.f32 %v2083_v1, %v356_v58 }
  0xcf   : > { %1349 = vst [vmem:[%s2095_s21 + $0x4d8] sm:$0xff] %v837_v62  ;;  %v358_v62 = vld [vmem:[%s2076_s28 + $0x5e8] sm:$0xff]  ;;  %v870_v2 = vmul.f32 %v2083_v1, %v357_v60 }
  0xd0   : > { %1350 = vst [vmem:[%s2095_s21 + $0x4e0] sm:$0xff] %v838_v0  ;;  %v359_v0 = vld [vmem:[%s2076_s28 + $0x5f0] sm:$0xff]  ;;  %v871_v4 = vmul.f32 %v2083_v1, %v358_v62 }
  0xd1   : > { %1351 = vst [vmem:[%s2095_s21 + $0x4e8] sm:$0xff] %v839_v3  ;;  %v360_v3 = vld [vmem:[%s2076_s28 + $0x5f8] sm:$0xff]  ;;  %v872_v6 = vmul.f32 %v2083_v1, %v359_v0 }
  0xd2   : > { %1352 = vst [vmem:[%s2095_s21 + $0x4f0] sm:$0xff] %v840_v5  ;;  %v361_v5 = vld [vmem:[%s2076_s28 + $0x600] sm:$0xff]  ;;  %v873_v8 = vmul.f32 %v2083_v1, %v360_v3 }
  0xd3   : > { %1353 = vst [vmem:[%s2095_s21 + $0x4f8] sm:$0xff] %v841_v7  ;;  %v362_v7 = vld [vmem:[%s2076_s28 + $0x608] sm:$0xff]  ;;  %v874_v10 = vmul.f32 %v2083_v1, %v361_v5 }
  0xd4   : > { %1354 = vst [vmem:[%s2095_s21 + $0x500] sm:$0xff] %v842_v9  ;;  %v363_v9 = vld [vmem:[%s2076_s28 + $0x610] sm:$0xff]  ;;  %v875_v12 = vmul.f32 %v2083_v1, %v362_v7 }
  0xd5   : > { %1355 = vst [vmem:[%s2095_s21 + $0x508] sm:$0xff] %v843_v11  ;;  %v364_v11 = vld [vmem:[%s2076_s28 + $0x618] sm:$0xff]  ;;  %v876_v14 = vmul.f32 %v2083_v1, %v363_v9 }
  0xd6   : > { %1356 = vst [vmem:[%s2095_s21 + $0x510] sm:$0xff] %v844_v13  ;;  %v365_v13 = vld [vmem:[%s2076_s28 + $0x620] sm:$0xff]  ;;  %v877_v16 = vmul.f32 %v2083_v1, %v364_v11 }
  0xd7   : > { %1357 = vst [vmem:[%s2095_s21 + $0x518] sm:$0xff] %v845_v15  ;;  %v366_v15 = vld [vmem:[%s2076_s28 + $0x628] sm:$0xff]  ;;  %v878_v18 = vmul.f32 %v2083_v1, %v365_v13 }
  0xd8   : > { %1358 = vst [vmem:[%s2095_s21 + $0x520] sm:$0xff] %v846_v17  ;;  %v367_v17 = vld [vmem:[%s2076_s28 + $0x630] sm:$0xff]  ;;  %v879_v20 = vmul.f32 %v2083_v1, %v366_v15 }
  0xd9   : > { %1359 = vst [vmem:[%s2095_s21 + $0x528] sm:$0xff] %v847_v19  ;;  %v368_v19 = vld [vmem:[%s2076_s28 + $0x638] sm:$0xff]  ;;  %v880_v22 = vmul.f32 %v2083_v1, %v367_v17 }
  0xda   : > { %1360 = vst [vmem:[%s2095_s21 + $0x530] sm:$0xff] %v848_v21  ;;  %v369_v21 = vld [vmem:[%s2076_s28 + $0x640] sm:$0xff]  ;;  %v881_v24 = vmul.f32 %v2083_v1, %v368_v19 }
  0xdb   : > { %1361 = vst [vmem:[%s2095_s21 + $0x538] sm:$0xff] %v849_v23  ;;  %v370_v23 = vld [vmem:[%s2076_s28 + $0x648] sm:$0xff]  ;;  %v882_v26 = vmul.f32 %v2083_v1, %v369_v21 }
  0xdc   : > { %1362 = vst [vmem:[%s2095_s21 + $0x540] sm:$0xff] %v850_v25  ;;  %v371_v25 = vld [vmem:[%s2076_s28 + $0x650] sm:$0xff]  ;;  %v883_v28 = vmul.f32 %v2083_v1, %v370_v23 }
  0xdd   : > { %1363 = vst [vmem:[%s2095_s21 + $0x548] sm:$0xff] %v851_v27  ;;  %v372_v27 = vld [vmem:[%s2076_s28 + $0x658] sm:$0xff]  ;;  %v884_v30 = vmul.f32 %v2083_v1, %v371_v25 }
  0xde   : > { %1364 = vst [vmem:[%s2095_s21 + $0x550] sm:$0xff] %v852_v29  ;;  %v373_v29 = vld [vmem:[%s2076_s28 + $0x660] sm:$0xff]  ;;  %v885_v32 = vmul.f32 %v2083_v1, %v372_v27 }
  0xdf   : > { %1365 = vst [vmem:[%s2095_s21 + $0x558] sm:$0xff] %v853_v31  ;;  %v374_v31 = vld [vmem:[%s2076_s28 + $0x668] sm:$0xff]  ;;  %v886_v34 = vmul.f32 %v2083_v1, %v373_v29 }
  0xe0   : > { %1366 = vst [vmem:[%s2095_s21 + $0x560] sm:$0xff] %v854_v33  ;;  %v375_v33 = vld [vmem:[%s2076_s28 + $0x670] sm:$0xff]  ;;  %v887_v36 = vmul.f32 %v2083_v1, %v374_v31 }
  0xe1   : > { %1367 = vst [vmem:[%s2095_s21 + $0x568] sm:$0xff] %v855_v35  ;;  %v376_v35 = vld [vmem:[%s2076_s28 + $0x678] sm:$0xff]  ;;  %v888_v38 = vmul.f32 %v2083_v1, %v375_v33 }
  0xe2   : > { %1368 = vst [vmem:[%s2095_s21 + $0x570] sm:$0xff] %v856_v37  ;;  %v377_v37 = vld [vmem:[%s2076_s28 + $0x680] sm:$0xff]  ;;  %v889_v40 = vmul.f32 %v2083_v1, %v376_v35 }
  0xe3   : > { %1369 = vst [vmem:[%s2095_s21 + $0x578] sm:$0xff] %v857_v39  ;;  %v378_v39 = vld [vmem:[%s2076_s28 + $0x688] sm:$0xff]  ;;  %v890_v42 = vmul.f32 %v2083_v1, %v377_v37 }
  0xe4   : > { %1370 = vst [vmem:[%s2095_s21 + $0x580] sm:$0xff] %v858_v41  ;;  %v379_v41 = vld [vmem:[%s2076_s28 + $0x690] sm:$0xff]  ;;  %v891_v44 = vmul.f32 %v2083_v1, %v378_v39 }
  0xe5   : > { %1371 = vst [vmem:[%s2095_s21 + $0x588] sm:$0xff] %v859_v43  ;;  %v380_v43 = vld [vmem:[%s2076_s28 + $0x698] sm:$0xff]  ;;  %v892_v46 = vmul.f32 %v2083_v1, %v379_v41 }
  0xe6   : > { %1372 = vst [vmem:[%s2095_s21 + $0x590] sm:$0xff] %v860_v45  ;;  %v381_v45 = vld [vmem:[%s2076_s28 + $0x6a0] sm:$0xff]  ;;  %v893_v48 = vmul.f32 %v2083_v1, %v380_v43 }
  0xe7   : > { %1373 = vst [vmem:[%s2095_s21 + $0x598] sm:$0xff] %v861_v47  ;;  %v382_v47 = vld [vmem:[%s2076_s28 + $0x6a8] sm:$0xff]  ;;  %v894_v50 = vmul.f32 %v2083_v1, %v381_v45 }
  0xe8   : > { %1374 = vst [vmem:[%s2095_s21 + $0x5a0] sm:$0xff] %v862_v49  ;;  %v383_v49 = vld [vmem:[%s2076_s28 + $0x6b0] sm:$0xff]  ;;  %v895_v52 = vmul.f32 %v2083_v1, %v382_v47 }
  0xe9   : > { %1375 = vst [vmem:[%s2095_s21 + $0x5a8] sm:$0xff] %v863_v51  ;;  %v384_v51 = vld [vmem:[%s2076_s28 + $0x6b8] sm:$0xff]  ;;  %v896_v54 = vmul.f32 %v2083_v1, %v383_v49 }
  0xea   : > { %1376 = vst [vmem:[%s2095_s21 + $0x5b0] sm:$0xff] %v864_v53  ;;  %v385_v53 = vld [vmem:[%s2076_s28 + $0x6c0] sm:$0xff]  ;;  %v897_v56 = vmul.f32 %v2083_v1, %v384_v51 }
  0xeb   : > { %1377 = vst [vmem:[%s2095_s21 + $0x5b8] sm:$0xff] %v865_v55  ;;  %v386_v55 = vld [vmem:[%s2076_s28 + $0x6c8] sm:$0xff]  ;;  %v898_v58 = vmul.f32 %v2083_v1, %v385_v53 }
  0xec   : > { %1378 = vst [vmem:[%s2095_s21 + $0x5c0] sm:$0xff] %v866_v57  ;;  %v387_v57 = vld [vmem:[%s2076_s28 + $0x6d0] sm:$0xff]  ;;  %v899_v60 = vmul.f32 %v2083_v1, %v386_v55 }
  0xed   : > { %1379 = vst [vmem:[%s2095_s21 + $0x5c8] sm:$0xff] %v867_v59  ;;  %v388_v59 = vld [vmem:[%s2076_s28 + $0x6d8] sm:$0xff]  ;;  %v900_v62 = vmul.f32 %v2083_v1, %v387_v57 }
  0xee   : > { %1380 = vst [vmem:[%s2095_s21 + $0x5d0] sm:$0xff] %v868_v61  ;;  %v389_v61 = vld [vmem:[%s2076_s28 + $0x6e0] sm:$0xff]  ;;  %v901_v0 = vmul.f32 %v2083_v1, %v388_v59 }
  0xef   : > { %1381 = vst [vmem:[%s2095_s21 + $0x5d8] sm:$0xff] %v869_v63  ;;  %v390_v63 = vld [vmem:[%s2076_s28 + $0x6e8] sm:$0xff]  ;;  %v902_v3 = vmul.f32 %v2083_v1, %v389_v61 }
  0xf0   : > { %1382 = vst [vmem:[%s2095_s21 + $0x5e0] sm:$0xff] %v870_v2  ;;  %v391_v2 = vld [vmem:[%s2076_s28 + $0x6f0] sm:$0xff]  ;;  %v903_v5 = vmul.f32 %v2083_v1, %v390_v63 }
  0xf1   : > { %1383 = vst [vmem:[%s2095_s21 + $0x5e8] sm:$0xff] %v871_v4  ;;  %v392_v4 = vld [vmem:[%s2076_s28 + $0x6f8] sm:$0xff]  ;;  %v904_v7 = vmul.f32 %v2083_v1, %v391_v2 }
  0xf2   : > { %1384 = vst [vmem:[%s2095_s21 + $0x5f0] sm:$0xff] %v872_v6  ;;  %v393_v6 = vld [vmem:[%s2076_s28 + $0x700] sm:$0xff]  ;;  %v905_v9 = vmul.f32 %v2083_v1, %v392_v4 }
  0xf3   : > { %1385 = vst [vmem:[%s2095_s21 + $0x5f8] sm:$0xff] %v873_v8  ;;  %v394_v8 = vld [vmem:[%s2076_s28 + $0x708] sm:$0xff]  ;;  %v906_v11 = vmul.f32 %v2083_v1, %v393_v6 }
  0xf4   : > { %1386 = vst [vmem:[%s2095_s21 + $0x600] sm:$0xff] %v874_v10  ;;  %v395_v10 = vld [vmem:[%s2076_s28 + $0x710] sm:$0xff]  ;;  %v907_v13 = vmul.f32 %v2083_v1, %v394_v8 }
  0xf5   : > { %1387 = vst [vmem:[%s2095_s21 + $0x608] sm:$0xff] %v875_v12  ;;  %v396_v12 = vld [vmem:[%s2076_s28 + $0x718] sm:$0xff]  ;;  %v908_v15 = vmul.f32 %v2083_v1, %v395_v10 }
  0xf6   : > { %1388 = vst [vmem:[%s2095_s21 + $0x610] sm:$0xff] %v876_v14  ;;  %v397_v14 = vld [vmem:[%s2076_s28 + $0x720] sm:$0xff]  ;;  %v909_v17 = vmul.f32 %v2083_v1, %v396_v12 }
  0xf7   : > { %1389 = vst [vmem:[%s2095_s21 + $0x618] sm:$0xff] %v877_v16  ;;  %v398_v16 = vld [vmem:[%s2076_s28 + $0x728] sm:$0xff]  ;;  %v910_v19 = vmul.f32 %v2083_v1, %v397_v14 }
  0xf8   : > { %1390 = vst [vmem:[%s2095_s21 + $0x620] sm:$0xff] %v878_v18  ;;  %v399_v18 = vld [vmem:[%s2076_s28 + $0x730] sm:$0xff]  ;;  %v911_v21 = vmul.f32 %v2083_v1, %v398_v16 }
  0xf9   : > { %1391 = vst [vmem:[%s2095_s21 + $0x628] sm:$0xff] %v879_v20  ;;  %v400_v20 = vld [vmem:[%s2076_s28 + $0x738] sm:$0xff]  ;;  %v912_v23 = vmul.f32 %v2083_v1, %v399_v18 }
  0xfa   : > { %1392 = vst [vmem:[%s2095_s21 + $0x630] sm:$0xff] %v880_v22  ;;  %v401_v22 = vld [vmem:[%s2076_s28 + $0x740] sm:$0xff]  ;;  %v913_v25 = vmul.f32 %v2083_v1, %v400_v20 }
  0xfb   : > { %1393 = vst [vmem:[%s2095_s21 + $0x638] sm:$0xff] %v881_v24  ;;  %v402_v24 = vld [vmem:[%s2076_s28 + $0x748] sm:$0xff]  ;;  %v914_v27 = vmul.f32 %v2083_v1, %v401_v22 }
  0xfc   : > { %1394 = vst [vmem:[%s2095_s21 + $0x640] sm:$0xff] %v882_v26  ;;  %v403_v26 = vld [vmem:[%s2076_s28 + $0x750] sm:$0xff]  ;;  %v915_v29 = vmul.f32 %v2083_v1, %v402_v24 }
  0xfd   : > { %1395 = vst [vmem:[%s2095_s21 + $0x648] sm:$0xff] %v883_v28  ;;  %v404_v28 = vld [vmem:[%s2076_s28 + $0x758] sm:$0xff]  ;;  %v916_v31 = vmul.f32 %v2083_v1, %v403_v26 }
  0xfe   : > { %1396 = vst [vmem:[%s2095_s21 + $0x650] sm:$0xff] %v884_v30  ;;  %v405_v30 = vld [vmem:[%s2076_s28 + $0x760] sm:$0xff]  ;;  %v917_v33 = vmul.f32 %v2083_v1, %v404_v28 }
  0xff   : > { %1397 = vst [vmem:[%s2095_s21 + $0x658] sm:$0xff] %v885_v32  ;;  %v406_v32 = vld [vmem:[%s2076_s28 + $0x768] sm:$0xff]  ;;  %v918_v35 = vmul.f32 %v2083_v1, %v405_v30 }
 0x100   : > { %1398 = vst [vmem:[%s2095_s21 + $0x660] sm:$0xff] %v886_v34  ;;  %v407_v34 = vld [vmem:[%s2076_s28 + $0x770] sm:$0xff]  ;;  %v919_v37 = vmul.f32 %v2083_v1, %v406_v32 }
 0x101   : > { %1399 = vst [vmem:[%s2095_s21 + $0x668] sm:$0xff] %v887_v36  ;;  %v408_v36 = vld [vmem:[%s2076_s28 + $0x778] sm:$0xff]  ;;  %v920_v39 = vmul.f32 %v2083_v1, %v407_v34 }
 0x102   : > { %1400 = vst [vmem:[%s2095_s21 + $0x670] sm:$0xff] %v888_v38  ;;  %v409_v38 = vld [vmem:[%s2076_s28 + $0x780] sm:$0xff]  ;;  %v921_v41 = vmul.f32 %v2083_v1, %v408_v36 }
 0x103   : > { %1401 = vst [vmem:[%s2095_s21 + $0x678] sm:$0xff] %v889_v40  ;;  %v410_v40 = vld [vmem:[%s2076_s28 + $0x788] sm:$0xff]  ;;  %v922_v43 = vmul.f32 %v2083_v1, %v409_v38 }
 0x104   : > { %1402 = vst [vmem:[%s2095_s21 + $0x680] sm:$0xff] %v890_v42  ;;  %v411_v42 = vld [vmem:[%s2076_s28 + $0x790] sm:$0xff]  ;;  %v923_v45 = vmul.f32 %v2083_v1, %v410_v40 }
 0x105   : > { %1403 = vst [vmem:[%s2095_s21 + $0x688] sm:$0xff] %v891_v44  ;;  %v412_v44 = vld [vmem:[%s2076_s28 + $0x798] sm:$0xff]  ;;  %v924_v47 = vmul.f32 %v2083_v1, %v411_v42 }
 0x106   : > { %1404 = vst [vmem:[%s2095_s21 + $0x690] sm:$0xff] %v892_v46  ;;  %v413_v46 = vld [vmem:[%s2076_s28 + $0x7a0] sm:$0xff]  ;;  %v925_v49 = vmul.f32 %v2083_v1, %v412_v44 }
 0x107   : > { %1405 = vst [vmem:[%s2095_s21 + $0x698] sm:$0xff] %v893_v48  ;;  %v414_v48 = vld [vmem:[%s2076_s28 + $0x7a8] sm:$0xff]  ;;  %v926_v51 = vmul.f32 %v2083_v1, %v413_v46 }
 0x108   : > { %1406 = vst [vmem:[%s2095_s21 + $0x6a0] sm:$0xff] %v894_v50  ;;  %v415_v50 = vld [vmem:[%s2076_s28 + $0x7b0] sm:$0xff]  ;;  %v927_v53 = vmul.f32 %v2083_v1, %v414_v48 }
 0x109   : > { %1407 = vst [vmem:[%s2095_s21 + $0x6a8] sm:$0xff] %v895_v52  ;;  %v416_v52 = vld [vmem:[%s2076_s28 + $0x7b8] sm:$0xff]  ;;  %v928_v55 = vmul.f32 %v2083_v1, %v415_v50 }
 0x10a   : > { %1408 = vst [vmem:[%s2095_s21 + $0x6b0] sm:$0xff] %v896_v54  ;;  %v417_v54 = vld [vmem:[%s2076_s28 + $0x7c0] sm:$0xff]  ;;  %v929_v57 = vmul.f32 %v2083_v1, %v416_v52 }
 0x10b   : > { %1409 = vst [vmem:[%s2095_s21 + $0x6b8] sm:$0xff] %v897_v56  ;;  %v418_v56 = vld [vmem:[%s2076_s28 + $0x7c8] sm:$0xff]  ;;  %v930_v59 = vmul.f32 %v2083_v1, %v417_v54 }
 0x10c   : > { %1410 = vst [vmem:[%s2095_s21 + $0x6c0] sm:$0xff] %v898_v58  ;;  %v419_v58 = vld [vmem:[%s2076_s28 + $0x7d0] sm:$0xff]  ;;  %v931_v61 = vmul.f32 %v2083_v1, %v418_v56 }
 0x10d   : > { %1411 = vst [vmem:[%s2095_s21 + $0x6c8] sm:$0xff] %v899_v60  ;;  %v420_v60 = vld [vmem:[%s2076_s28 + $0x7d8] sm:$0xff]  ;;  %v932_v63 = vmul.f32 %v2083_v1, %v419_v58 }
 0x10e   : > { %1412 = vst [vmem:[%s2095_s21 + $0x6d0] sm:$0xff] %v900_v62  ;;  %v421_v62 = vld [vmem:[%s2076_s28 + $0x7e0] sm:$0xff]  ;;  %v933_v2 = vmul.f32 %v2083_v1, %v420_v60 }
 0x10f   : > { %1413 = vst [vmem:[%s2095_s21 + $0x6d8] sm:$0xff] %v901_v0  ;;  %v422_v0 = vld [vmem:[%s2076_s28 + $0x7e8] sm:$0xff]  ;;  %v934_v4 = vmul.f32 %v2083_v1, %v421_v62 }
 0x110   : > { %1414 = vst [vmem:[%s2095_s21 + $0x6e0] sm:$0xff] %v902_v3  ;;  %v423_v3 = vld [vmem:[%s2076_s28 + $0x7f0] sm:$0xff]  ;;  %v935_v6 = vmul.f32 %v2083_v1, %v422_v0 }
 0x111   : > { %1415 = vst [vmem:[%s2095_s21 + $0x6e8] sm:$0xff] %v903_v5  ;;  %v424_v5 = vld [vmem:[%s2076_s28 + $0x7f8] sm:$0xff]  ;;  %v936_v8 = vmul.f32 %v2083_v1, %v423_v3 }
 0x112   : > { %1416 = vst [vmem:[%s2095_s21 + $0x6f0] sm:$0xff] %v904_v7  ;;  %v425_v7 = vld [vmem:[%s2076_s28 + $0x800] sm:$0xff]  ;;  %v937_v10 = vmul.f32 %v2083_v1, %v424_v5 }
 0x113   : > { %1417 = vst [vmem:[%s2095_s21 + $0x6f8] sm:$0xff] %v905_v9  ;;  %v426_v9 = vld [vmem:[%s2076_s28 + $0x808] sm:$0xff]  ;;  %v938_v12 = vmul.f32 %v2083_v1, %v425_v7 }
 0x114   : > { %1418 = vst [vmem:[%s2095_s21 + $0x700] sm:$0xff] %v906_v11  ;;  %v427_v11 = vld [vmem:[%s2076_s28 + $0x810] sm:$0xff]  ;;  %v939_v14 = vmul.f32 %v2083_v1, %v426_v9 }
 0x115   : > { %1419 = vst [vmem:[%s2095_s21 + $0x708] sm:$0xff] %v907_v13  ;;  %v428_v13 = vld [vmem:[%s2076_s28 + $0x818] sm:$0xff]  ;;  %v940_v16 = vmul.f32 %v2083_v1, %v427_v11 }
 0x116   : > { %1420 = vst [vmem:[%s2095_s21 + $0x710] sm:$0xff] %v908_v15  ;;  %v429_v15 = vld [vmem:[%s2076_s28 + $0x820] sm:$0xff]  ;;  %v941_v18 = vmul.f32 %v2083_v1, %v428_v13 }
 0x117   : > { %1421 = vst [vmem:[%s2095_s21 + $0x718] sm:$0xff] %v909_v17  ;;  %v430_v17 = vld [vmem:[%s2076_s28 + $0x828] sm:$0xff]  ;;  %v942_v20 = vmul.f32 %v2083_v1, %v429_v15 }
 0x118   : > { %1422 = vst [vmem:[%s2095_s21 + $0x720] sm:$0xff] %v910_v19  ;;  %v431_v19 = vld [vmem:[%s2076_s28 + $0x830] sm:$0xff]  ;;  %v943_v22 = vmul.f32 %v2083_v1, %v430_v17 }
 0x119   : > { %1423 = vst [vmem:[%s2095_s21 + $0x728] sm:$0xff] %v911_v21  ;;  %v432_v21 = vld [vmem:[%s2076_s28 + $0x838] sm:$0xff]  ;;  %v944_v24 = vmul.f32 %v2083_v1, %v431_v19 }
 0x11a   : > { %1424 = vst [vmem:[%s2095_s21 + $0x730] sm:$0xff] %v912_v23  ;;  %v433_v23 = vld [vmem:[%s2076_s28 + $0x840] sm:$0xff]  ;;  %v945_v26 = vmul.f32 %v2083_v1, %v432_v21 }
 0x11b   : > { %1425 = vst [vmem:[%s2095_s21 + $0x738] sm:$0xff] %v913_v25  ;;  %v434_v25 = vld [vmem:[%s2076_s28 + $0x848] sm:$0xff]  ;;  %v946_v28 = vmul.f32 %v2083_v1, %v433_v23 }
 0x11c   : > { %1426 = vst [vmem:[%s2095_s21 + $0x740] sm:$0xff] %v914_v27  ;;  %v435_v27 = vld [vmem:[%s2076_s28 + $0x850] sm:$0xff]  ;;  %v947_v30 = vmul.f32 %v2083_v1, %v434_v25 }
 0x11d   : > { %1427 = vst [vmem:[%s2095_s21 + $0x748] sm:$0xff] %v915_v29  ;;  %v436_v29 = vld [vmem:[%s2076_s28 + $0x858] sm:$0xff]  ;;  %v948_v32 = vmul.f32 %v2083_v1, %v435_v27 }
 0x11e   : > { %1428 = vst [vmem:[%s2095_s21 + $0x750] sm:$0xff] %v916_v31  ;;  %v437_v31 = vld [vmem:[%s2076_s28 + $0x860] sm:$0xff]  ;;  %v949_v34 = vmul.f32 %v2083_v1, %v436_v29 }
 0x11f   : > { %1429 = vst [vmem:[%s2095_s21 + $0x758] sm:$0xff] %v917_v33  ;;  %v438_v33 = vld [vmem:[%s2076_s28 + $0x868] sm:$0xff]  ;;  %v950_v36 = vmul.f32 %v2083_v1, %v437_v31 }
 0x120   : > { %1430 = vst [vmem:[%s2095_s21 + $0x760] sm:$0xff] %v918_v35  ;;  %v439_v35 = vld [vmem:[%s2076_s28 + $0x870] sm:$0xff]  ;;  %v951_v38 = vmul.f32 %v2083_v1, %v438_v33 }
 0x121   : > { %1431 = vst [vmem:[%s2095_s21 + $0x768] sm:$0xff] %v919_v37  ;;  %v440_v37 = vld [vmem:[%s2076_s28 + $0x878] sm:$0xff]  ;;  %v952_v40 = vmul.f32 %v2083_v1, %v439_v35 }
 0x122   : > { %1432 = vst [vmem:[%s2095_s21 + $0x770] sm:$0xff] %v920_v39  ;;  %v441_v39 = vld [vmem:[%s2076_s28 + $0x880] sm:$0xff]  ;;  %v953_v42 = vmul.f32 %v2083_v1, %v440_v37 }
 0x123   : > { %1433 = vst [vmem:[%s2095_s21 + $0x778] sm:$0xff] %v921_v41  ;;  %v442_v41 = vld [vmem:[%s2076_s28 + $0x888] sm:$0xff]  ;;  %v954_v44 = vmul.f32 %v2083_v1, %v441_v39 }
 0x124   : > { %1434 = vst [vmem:[%s2095_s21 + $0x780] sm:$0xff] %v922_v43  ;;  %v443_v43 = vld [vmem:[%s2076_s28 + $0x890] sm:$0xff]  ;;  %v955_v46 = vmul.f32 %v2083_v1, %v442_v41 }
 0x125   : > { %1435 = vst [vmem:[%s2095_s21 + $0x788] sm:$0xff] %v923_v45  ;;  %v444_v45 = vld [vmem:[%s2076_s28 + $0x898] sm:$0xff]  ;;  %v956_v48 = vmul.f32 %v2083_v1, %v443_v43 }
 0x126   : > { %1436 = vst [vmem:[%s2095_s21 + $0x790] sm:$0xff] %v924_v47  ;;  %v445_v47 = vld [vmem:[%s2076_s28 + $0x8a0] sm:$0xff]  ;;  %v957_v50 = vmul.f32 %v2083_v1, %v444_v45 }
 0x127   : > { %1437 = vst [vmem:[%s2095_s21 + $0x798] sm:$0xff] %v925_v49  ;;  %v446_v49 = vld [vmem:[%s2076_s28 + $0x8a8] sm:$0xff]  ;;  %v958_v52 = vmul.f32 %v2083_v1, %v445_v47 }
 0x128   : > { %1438 = vst [vmem:[%s2095_s21 + $0x7a0] sm:$0xff] %v926_v51  ;;  %v447_v51 = vld [vmem:[%s2076_s28 + $0x8b0] sm:$0xff]  ;;  %v959_v54 = vmul.f32 %v2083_v1, %v446_v49 }
 0x129   : > { %1439 = vst [vmem:[%s2095_s21 + $0x7a8] sm:$0xff] %v927_v53  ;;  %v448_v53 = vld [vmem:[%s2076_s28 + $0x8b8] sm:$0xff]  ;;  %v960_v56 = vmul.f32 %v2083_v1, %v447_v51 }
 0x12a   : > { %1440 = vst [vmem:[%s2095_s21 + $0x7b0] sm:$0xff] %v928_v55  ;;  %v449_v55 = vld [vmem:[%s2076_s28 + $0x8c0] sm:$0xff]  ;;  %v961_v58 = vmul.f32 %v2083_v1, %v448_v53 }
 0x12b   : > { %1441 = vst [vmem:[%s2095_s21 + $0x7b8] sm:$0xff] %v929_v57  ;;  %v450_v57 = vld [vmem:[%s2076_s28 + $0x8c8] sm:$0xff]  ;;  %v962_v60 = vmul.f32 %v2083_v1, %v449_v55 }
 0x12c   : > { %1442 = vst [vmem:[%s2095_s21 + $0x7c0] sm:$0xff] %v930_v59  ;;  %v451_v59 = vld [vmem:[%s2076_s28 + $0x8d0] sm:$0xff]  ;;  %v963_v62 = vmul.f32 %v2083_v1, %v450_v57 }
 0x12d   : > { %1443 = vst [vmem:[%s2095_s21 + $0x7c8] sm:$0xff] %v931_v61  ;;  %v452_v61 = vld [vmem:[%s2076_s28 + $0x8d8] sm:$0xff]  ;;  %v964_v0 = vmul.f32 %v2083_v1, %v451_v59 }
 0x12e   : > { %1444 = vst [vmem:[%s2095_s21 + $0x7d0] sm:$0xff] %v932_v63  ;;  %v453_v63 = vld [vmem:[%s2076_s28 + $0x8e0] sm:$0xff]  ;;  %v965_v3 = vmul.f32 %v2083_v1, %v452_v61 }
 0x12f   : > { %1445 = vst [vmem:[%s2095_s21 + $0x7d8] sm:$0xff] %v933_v2  ;;  %v454_v2 = vld [vmem:[%s2076_s28 + $0x8e8] sm:$0xff]  ;;  %v966_v5 = vmul.f32 %v2083_v1, %v453_v63 }
 0x130   : > { %1446 = vst [vmem:[%s2095_s21 + $0x7e0] sm:$0xff] %v934_v4  ;;  %v455_v4 = vld [vmem:[%s2076_s28 + $0x8f0] sm:$0xff]  ;;  %v967_v7 = vmul.f32 %v2083_v1, %v454_v2 }
 0x131   : > { %1447 = vst [vmem:[%s2095_s21 + $0x7e8] sm:$0xff] %v935_v6  ;;  %v456_v6 = vld [vmem:[%s2076_s28 + $0x8f8] sm:$0xff]  ;;  %v968_v9 = vmul.f32 %v2083_v1, %v455_v4 }
 0x132   : > { %1448 = vst [vmem:[%s2095_s21 + $0x7f0] sm:$0xff] %v936_v8  ;;  %v457_v8 = vld [vmem:[%s2076_s28 + $0x900] sm:$0xff]  ;;  %v969_v11 = vmul.f32 %v2083_v1, %v456_v6 }
 0x133   : > { %1449 = vst [vmem:[%s2095_s21 + $0x7f8] sm:$0xff] %v937_v10  ;;  %v458_v10 = vld [vmem:[%s2076_s28 + $0x908] sm:$0xff]  ;;  %v970_v13 = vmul.f32 %v2083_v1, %v457_v8 }
 0x134   : > { %1450 = vst [vmem:[%s2095_s21 + $0x800] sm:$0xff] %v938_v12  ;;  %v459_v12 = vld [vmem:[%s2076_s28 + $0x910] sm:$0xff]  ;;  %v971_v15 = vmul.f32 %v2083_v1, %v458_v10 }
 0x135   : > { %1451 = vst [vmem:[%s2095_s21 + $0x808] sm:$0xff] %v939_v14  ;;  %v460_v14 = vld [vmem:[%s2076_s28 + $0x918] sm:$0xff]  ;;  %v972_v17 = vmul.f32 %v2083_v1, %v459_v12 }
 0x136   : > { %1452 = vst [vmem:[%s2095_s21 + $0x810] sm:$0xff] %v940_v16  ;;  %v461_v16 = vld [vmem:[%s2076_s28 + $0x920] sm:$0xff]  ;;  %v973_v19 = vmul.f32 %v2083_v1, %v460_v14 }
 0x137   : > { %1453 = vst [vmem:[%s2095_s21 + $0x818] sm:$0xff] %v941_v18  ;;  %v462_v18 = vld [vmem:[%s2076_s28 + $0x928] sm:$0xff]  ;;  %v974_v21 = vmul.f32 %v2083_v1, %v461_v16 }
 0x138   : > { %1454 = vst [vmem:[%s2095_s21 + $0x820] sm:$0xff] %v942_v20  ;;  %v463_v20 = vld [vmem:[%s2076_s28 + $0x930] sm:$0xff]  ;;  %v975_v23 = vmul.f32 %v2083_v1, %v462_v18 }
 0x139   : > { %1455 = vst [vmem:[%s2095_s21 + $0x828] sm:$0xff] %v943_v22  ;;  %v464_v22 = vld [vmem:[%s2076_s28 + $0x938] sm:$0xff]  ;;  %v976_v25 = vmul.f32 %v2083_v1, %v463_v20 }
 0x13a   : > { %1456 = vst [vmem:[%s2095_s21 + $0x830] sm:$0xff] %v944_v24  ;;  %v465_v24 = vld [vmem:[%s2076_s28 + $0x940] sm:$0xff]  ;;  %v977_v27 = vmul.f32 %v2083_v1, %v464_v22 }
 0x13b   : > { %1457 = vst [vmem:[%s2095_s21 + $0x838] sm:$0xff] %v945_v26  ;;  %v466_v26 = vld [vmem:[%s2076_s28 + $0x948] sm:$0xff]  ;;  %v978_v29 = vmul.f32 %v2083_v1, %v465_v24 }
 0x13c   : > { %1458 = vst [vmem:[%s2095_s21 + $0x840] sm:$0xff] %v946_v28  ;;  %v467_v28 = vld [vmem:[%s2076_s28 + $0x950] sm:$0xff]  ;;  %v979_v31 = vmul.f32 %v2083_v1, %v466_v26 }
 0x13d   : > { %1459 = vst [vmem:[%s2095_s21 + $0x848] sm:$0xff] %v947_v30  ;;  %v468_v30 = vld [vmem:[%s2076_s28 + $0x958] sm:$0xff]  ;;  %v980_v33 = vmul.f32 %v2083_v1, %v467_v28 }
 0x13e   : > { %1460 = vst [vmem:[%s2095_s21 + $0x850] sm:$0xff] %v948_v32  ;;  %v469_v32 = vld [vmem:[%s2076_s28 + $0x960] sm:$0xff]  ;;  %v981_v35 = vmul.f32 %v2083_v1, %v468_v30 }
 0x13f   : > { %1461 = vst [vmem:[%s2095_s21 + $0x858] sm:$0xff] %v949_v34  ;;  %v470_v34 = vld [vmem:[%s2076_s28 + $0x968] sm:$0xff]  ;;  %v982_v37 = vmul.f32 %v2083_v1, %v469_v32 }
 0x140   : > { %1462 = vst [vmem:[%s2095_s21 + $0x860] sm:$0xff] %v950_v36  ;;  %v471_v36 = vld [vmem:[%s2076_s28 + $0x970] sm:$0xff]  ;;  %v983_v39 = vmul.f32 %v2083_v1, %v470_v34 }
 0x141   : > { %1463 = vst [vmem:[%s2095_s21 + $0x868] sm:$0xff] %v951_v38  ;;  %v472_v38 = vld [vmem:[%s2076_s28 + $0x978] sm:$0xff]  ;;  %v984_v41 = vmul.f32 %v2083_v1, %v471_v36 }
 0x142   : > { %1464 = vst [vmem:[%s2095_s21 + $0x870] sm:$0xff] %v952_v40  ;;  %v473_v40 = vld [vmem:[%s2076_s28 + $0x980] sm:$0xff]  ;;  %v985_v43 = vmul.f32 %v2083_v1, %v472_v38 }
 0x143   : > { %1465 = vst [vmem:[%s2095_s21 + $0x878] sm:$0xff] %v953_v42  ;;  %v474_v42 = vld [vmem:[%s2076_s28 + $0x988] sm:$0xff]  ;;  %v986_v45 = vmul.f32 %v2083_v1, %v473_v40 }
 0x144   : > { %1466 = vst [vmem:[%s2095_s21 + $0x880] sm:$0xff] %v954_v44  ;;  %v475_v44 = vld [vmem:[%s2076_s28 + $0x990] sm:$0xff]  ;;  %v987_v47 = vmul.f32 %v2083_v1, %v474_v42 }
 0x145   : > { %1467 = vst [vmem:[%s2095_s21 + $0x888] sm:$0xff] %v955_v46  ;;  %v476_v46 = vld [vmem:[%s2076_s28 + $0x998] sm:$0xff]  ;;  %v988_v49 = vmul.f32 %v2083_v1, %v475_v44 }
 0x146   : > { %1468 = vst [vmem:[%s2095_s21 + $0x890] sm:$0xff] %v956_v48  ;;  %v477_v48 = vld [vmem:[%s2076_s28 + $0x9a0] sm:$0xff]  ;;  %v989_v51 = vmul.f32 %v2083_v1, %v476_v46 }
 0x147   : > { %1469 = vst [vmem:[%s2095_s21 + $0x898] sm:$0xff] %v957_v50  ;;  %v478_v50 = vld [vmem:[%s2076_s28 + $0x9a8] sm:$0xff]  ;;  %v990_v53 = vmul.f32 %v2083_v1, %v477_v48 }
 0x148   : > { %1470 = vst [vmem:[%s2095_s21 + $0x8a0] sm:$0xff] %v958_v52  ;;  %v479_v52 = vld [vmem:[%s2076_s28 + $0x9b0] sm:$0xff]  ;;  %v991_v55 = vmul.f32 %v2083_v1, %v478_v50 }
 0x149   : > { %1471 = vst [vmem:[%s2095_s21 + $0x8a8] sm:$0xff] %v959_v54  ;;  %v480_v54 = vld [vmem:[%s2076_s28 + $0x9b8] sm:$0xff]  ;;  %v992_v57 = vmul.f32 %v2083_v1, %v479_v52 }
 0x14a   : > { %1472 = vst [vmem:[%s2095_s21 + $0x8b0] sm:$0xff] %v960_v56  ;;  %v481_v56 = vld [vmem:[%s2076_s28 + $0x9c0] sm:$0xff]  ;;  %v993_v59 = vmul.f32 %v2083_v1, %v480_v54 }
 0x14b   : > { %1473 = vst [vmem:[%s2095_s21 + $0x8b8] sm:$0xff] %v961_v58  ;;  %v482_v58 = vld [vmem:[%s2076_s28 + $0x9c8] sm:$0xff]  ;;  %v994_v61 = vmul.f32 %v2083_v1, %v481_v56 }
 0x14c   : > { %1474 = vst [vmem:[%s2095_s21 + $0x8c0] sm:$0xff] %v962_v60  ;;  %v483_v60 = vld [vmem:[%s2076_s28 + $0x9d0] sm:$0xff]  ;;  %v995_v63 = vmul.f32 %v2083_v1, %v482_v58 }
 0x14d   : > { %1475 = vst [vmem:[%s2095_s21 + $0x8c8] sm:$0xff] %v963_v62  ;;  %v484_v62 = vld [vmem:[%s2076_s28 + $0x9d8] sm:$0xff]  ;;  %v996_v2 = vmul.f32 %v2083_v1, %v483_v60 }
 0x14e   : > { %1476 = vst [vmem:[%s2095_s21 + $0x8d0] sm:$0xff] %v964_v0  ;;  %v485_v0 = vld [vmem:[%s2076_s28 + $0x9e0] sm:$0xff]  ;;  %v997_v4 = vmul.f32 %v2083_v1, %v484_v62 }
 0x14f   : > { %1477 = vst [vmem:[%s2095_s21 + $0x8d8] sm:$0xff] %v965_v3  ;;  %v486_v3 = vld [vmem:[%s2076_s28 + $0x9e8] sm:$0xff]  ;;  %v998_v6 = vmul.f32 %v2083_v1, %v485_v0 }
 0x150   : > { %1478 = vst [vmem:[%s2095_s21 + $0x8e0] sm:$0xff] %v966_v5  ;;  %v487_v5 = vld [vmem:[%s2076_s28 + $0x9f0] sm:$0xff]  ;;  %v999_v8 = vmul.f32 %v2083_v1, %v486_v3 }
 0x151   : > { %1479 = vst [vmem:[%s2095_s21 + $0x8e8] sm:$0xff] %v967_v7  ;;  %v488_v7 = vld [vmem:[%s2076_s28 + $0x9f8] sm:$0xff]  ;;  %v1000_v10 = vmul.f32 %v2083_v1, %v487_v5 }
 0x152   : > { %1480 = vst [vmem:[%s2095_s21 + $0x8f0] sm:$0xff] %v968_v9  ;;  %v489_v9 = vld [vmem:[%s2076_s28 + $0xa00] sm:$0xff]  ;;  %v1001_v12 = vmul.f32 %v2083_v1, %v488_v7 }
 0x153   : > { %1481 = vst [vmem:[%s2095_s21 + $0x8f8] sm:$0xff] %v969_v11  ;;  %v490_v11 = vld [vmem:[%s2076_s28 + $0xa08] sm:$0xff]  ;;  %v1002_v14 = vmul.f32 %v2083_v1, %v489_v9 }
 0x154   : > { %1482 = vst [vmem:[%s2095_s21 + $0x900] sm:$0xff] %v970_v13  ;;  %v491_v13 = vld [vmem:[%s2076_s28 + $0xa10] sm:$0xff]  ;;  %v1003_v16 = vmul.f32 %v2083_v1, %v490_v11 }
 0x155   : > { %1483 = vst [vmem:[%s2095_s21 + $0x908] sm:$0xff] %v971_v15  ;;  %v492_v15 = vld [vmem:[%s2076_s28 + $0xa18] sm:$0xff]  ;;  %v1004_v18 = vmul.f32 %v2083_v1, %v491_v13 }
 0x156   : > { %1484 = vst [vmem:[%s2095_s21 + $0x910] sm:$0xff] %v972_v17  ;;  %v493_v17 = vld [vmem:[%s2076_s28 + $0xa20] sm:$0xff]  ;;  %v1005_v20 = vmul.f32 %v2083_v1, %v492_v15 }
 0x157   : > { %1485 = vst [vmem:[%s2095_s21 + $0x918] sm:$0xff] %v973_v19  ;;  %v494_v19 = vld [vmem:[%s2076_s28 + $0xa28] sm:$0xff]  ;;  %v1006_v22 = vmul.f32 %v2083_v1, %v493_v17 }
 0x158   : > { %1486 = vst [vmem:[%s2095_s21 + $0x920] sm:$0xff] %v974_v21  ;;  %v495_v21 = vld [vmem:[%s2076_s28 + $0xa30] sm:$0xff]  ;;  %v1007_v24 = vmul.f32 %v2083_v1, %v494_v19 }
 0x159   : > { %1487 = vst [vmem:[%s2095_s21 + $0x928] sm:$0xff] %v975_v23  ;;  %v496_v23 = vld [vmem:[%s2076_s28 + $0xa38] sm:$0xff]  ;;  %v1008_v26 = vmul.f32 %v2083_v1, %v495_v21 }
 0x15a   : > { %1488 = vst [vmem:[%s2095_s21 + $0x930] sm:$0xff] %v976_v25  ;;  %v497_v25 = vld [vmem:[%s2076_s28 + $0xa40] sm:$0xff]  ;;  %v1009_v28 = vmul.f32 %v2083_v1, %v496_v23 }
 0x15b   : > { %1489 = vst [vmem:[%s2095_s21 + $0x938] sm:$0xff] %v977_v27  ;;  %v498_v27 = vld [vmem:[%s2076_s28 + $0xa48] sm:$0xff]  ;;  %v1010_v30 = vmul.f32 %v2083_v1, %v497_v25 }
 0x15c   : > { %1490 = vst [vmem:[%s2095_s21 + $0x940] sm:$0xff] %v978_v29  ;;  %v499_v29 = vld [vmem:[%s2076_s28 + $0xa50] sm:$0xff]  ;;  %v1011_v32 = vmul.f32 %v2083_v1, %v498_v27 }
 0x15d   : > { %1491 = vst [vmem:[%s2095_s21 + $0x948] sm:$0xff] %v979_v31  ;;  %v500_v31 = vld [vmem:[%s2076_s28 + $0xa58] sm:$0xff]  ;;  %v1012_v34 = vmul.f32 %v2083_v1, %v499_v29 }
 0x15e   : > { %1492 = vst [vmem:[%s2095_s21 + $0x950] sm:$0xff] %v980_v33  ;;  %v501_v33 = vld [vmem:[%s2076_s28 + $0xa60] sm:$0xff]  ;;  %v1013_v36 = vmul.f32 %v2083_v1, %v500_v31 }
 0x15f   : > { %1493 = vst [vmem:[%s2095_s21 + $0x958] sm:$0xff] %v981_v35  ;;  %v502_v35 = vld [vmem:[%s2076_s28 + $0xa68] sm:$0xff]  ;;  %v1014_v38 = vmul.f32 %v2083_v1, %v501_v33 }
 0x160   : > { %1494 = vst [vmem:[%s2095_s21 + $0x960] sm:$0xff] %v982_v37  ;;  %v503_v37 = vld [vmem:[%s2076_s28 + $0xa70] sm:$0xff]  ;;  %v1015_v40 = vmul.f32 %v2083_v1, %v502_v35 }
 0x161   : > { %1495 = vst [vmem:[%s2095_s21 + $0x968] sm:$0xff] %v983_v39  ;;  %v504_v39 = vld [vmem:[%s2076_s28 + $0xa78] sm:$0xff]  ;;  %v1016_v42 = vmul.f32 %v2083_v1, %v503_v37 }
 0x162   : > { %1496 = vst [vmem:[%s2095_s21 + $0x970] sm:$0xff] %v984_v41  ;;  %v505_v41 = vld [vmem:[%s2076_s28 + $0xa80] sm:$0xff]  ;;  %v1017_v44 = vmul.f32 %v2083_v1, %v504_v39 }
 0x163   : > { %1497 = vst [vmem:[%s2095_s21 + $0x978] sm:$0xff] %v985_v43  ;;  %v506_v43 = vld [vmem:[%s2076_s28 + $0xa88] sm:$0xff]  ;;  %v1018_v46 = vmul.f32 %v2083_v1, %v505_v41 }
 0x164   : > { %1498 = vst [vmem:[%s2095_s21 + $0x980] sm:$0xff] %v986_v45  ;;  %v507_v45 = vld [vmem:[%s2076_s28 + $0xa90] sm:$0xff]  ;;  %v1019_v48 = vmul.f32 %v2083_v1, %v506_v43 }
 0x165   : > { %1499 = vst [vmem:[%s2095_s21 + $0x988] sm:$0xff] %v987_v47  ;;  %v508_v47 = vld [vmem:[%s2076_s28 + $0xa98] sm:$0xff]  ;;  %v1020_v50 = vmul.f32 %v2083_v1, %v507_v45 }
 0x166   : > { %1500 = vst [vmem:[%s2095_s21 + $0x990] sm:$0xff] %v988_v49  ;;  %v509_v49 = vld [vmem:[%s2076_s28 + $0xaa0] sm:$0xff]  ;;  %v1021_v52 = vmul.f32 %v2083_v1, %v508_v47 }
 0x167   : > { %1501 = vst [vmem:[%s2095_s21 + $0x998] sm:$0xff] %v989_v51  ;;  %v510_v51 = vld [vmem:[%s2076_s28 + $0xaa8] sm:$0xff]  ;;  %v1022_v54 = vmul.f32 %v2083_v1, %v509_v49 }
 0x168   : > { %1502 = vst [vmem:[%s2095_s21 + $0x9a0] sm:$0xff] %v990_v53  ;;  %v511_v53 = vld [vmem:[%s2076_s28 + $0xab0] sm:$0xff]  ;;  %v1023_v56 = vmul.f32 %v2083_v1, %v510_v51 }
 0x169   : > { %1503 = vst [vmem:[%s2095_s21 + $0x9a8] sm:$0xff] %v991_v55  ;;  %v512_v55 = vld [vmem:[%s2076_s28 + $0xab8] sm:$0xff]  ;;  %v1024_v58 = vmul.f32 %v2083_v1, %v511_v53 }
 0x16a   : > { %1504 = vst [vmem:[%s2095_s21 + $0x9b0] sm:$0xff] %v992_v57  ;;  %v513_v57 = vld [vmem:[%s2076_s28 + $0xac0] sm:$0xff]  ;;  %v1025_v60 = vmul.f32 %v2083_v1, %v512_v55 }
 0x16b   : > { %1505 = vst [vmem:[%s2095_s21 + $0x9b8] sm:$0xff] %v993_v59  ;;  %v514_v59 = vld [vmem:[%s2076_s28 + $0xac8] sm:$0xff]  ;;  %v1026_v62 = vmul.f32 %v2083_v1, %v513_v57 }
 0x16c   : > { %1506 = vst [vmem:[%s2095_s21 + $0x9c0] sm:$0xff] %v994_v61  ;;  %v515_v61 = vld [vmem:[%s2076_s28 + $0xad0] sm:$0xff]  ;;  %v1027_v0 = vmul.f32 %v2083_v1, %v514_v59 }
 0x16d   : > { %1507 = vst [vmem:[%s2095_s21 + $0x9c8] sm:$0xff] %v995_v63  ;;  %v516_v63 = vld [vmem:[%s2076_s28 + $0xad8] sm:$0xff]  ;;  %v1028_v3 = vmul.f32 %v2083_v1, %v515_v61 }
 0x16e   : > { %1508 = vst [vmem:[%s2095_s21 + $0x9d0] sm:$0xff] %v996_v2  ;;  %v517_v2 = vld [vmem:[%s2076_s28 + $0xae0] sm:$0xff]  ;;  %v1029_v5 = vmul.f32 %v2083_v1, %v516_v63 }
 0x16f   : > { %1509 = vst [vmem:[%s2095_s21 + $0x9d8] sm:$0xff] %v997_v4  ;;  %v518_v4 = vld [vmem:[%s2076_s28 + $0xae8] sm:$0xff]  ;;  %v1030_v7 = vmul.f32 %v2083_v1, %v517_v2 }
 0x170   : > { %1510 = vst [vmem:[%s2095_s21 + $0x9e0] sm:$0xff] %v998_v6  ;;  %v519_v6 = vld [vmem:[%s2076_s28 + $0xaf0] sm:$0xff]  ;;  %v1031_v9 = vmul.f32 %v2083_v1, %v518_v4 }
 0x171   : > { %1511 = vst [vmem:[%s2095_s21 + $0x9e8] sm:$0xff] %v999_v8  ;;  %v520_v8 = vld [vmem:[%s2076_s28 + $0xaf8] sm:$0xff]  ;;  %v1032_v11 = vmul.f32 %v2083_v1, %v519_v6 }
 0x172   : > { %1512 = vst [vmem:[%s2095_s21 + $0x9f0] sm:$0xff] %v1000_v10  ;;  %v521_v10 = vld [vmem:[%s2076_s28 + $0xb00] sm:$0xff]  ;;  %v1033_v13 = vmul.f32 %v2083_v1, %v520_v8 }
 0x173   : > { %1513 = vst [vmem:[%s2095_s21 + $0x9f8] sm:$0xff] %v1001_v12  ;;  %v522_v12 = vld [vmem:[%s2076_s28 + $0xb08] sm:$0xff]  ;;  %v1034_v15 = vmul.f32 %v2083_v1, %v521_v10 }
 0x174   : > { %1514 = vst [vmem:[%s2095_s21 + $0xa00] sm:$0xff] %v1002_v14  ;;  %v523_v14 = vld [vmem:[%s2076_s28 + $0xb10] sm:$0xff]  ;;  %v1035_v17 = vmul.f32 %v2083_v1, %v522_v12 }
 0x175   : > { %1515 = vst [vmem:[%s2095_s21 + $0xa08] sm:$0xff] %v1003_v16  ;;  %v524_v16 = vld [vmem:[%s2076_s28 + $0xb18] sm:$0xff]  ;;  %v1036_v19 = vmul.f32 %v2083_v1, %v523_v14 }
 0x176   : > { %1516 = vst [vmem:[%s2095_s21 + $0xa10] sm:$0xff] %v1004_v18  ;;  %v525_v18 = vld [vmem:[%s2076_s28 + $0xb20] sm:$0xff]  ;;  %v1037_v21 = vmul.f32 %v2083_v1, %v524_v16 }
 0x177   : > { %1517 = vst [vmem:[%s2095_s21 + $0xa18] sm:$0xff] %v1005_v20  ;;  %v526_v20 = vld [vmem:[%s2076_s28 + $0xb28] sm:$0xff]  ;;  %v1038_v23 = vmul.f32 %v2083_v1, %v525_v18 }
 0x178   : > { %1518 = vst [vmem:[%s2095_s21 + $0xa20] sm:$0xff] %v1006_v22  ;;  %v527_v22 = vld [vmem:[%s2076_s28 + $0xb30] sm:$0xff]  ;;  %v1039_v25 = vmul.f32 %v2083_v1, %v526_v20 }
 0x179   : > { %1519 = vst [vmem:[%s2095_s21 + $0xa28] sm:$0xff] %v1007_v24  ;;  %v528_v24 = vld [vmem:[%s2076_s28 + $0xb38] sm:$0xff]  ;;  %v1040_v27 = vmul.f32 %v2083_v1, %v527_v22 }
 0x17a   : > { %1520 = vst [vmem:[%s2095_s21 + $0xa30] sm:$0xff] %v1008_v26  ;;  %v529_v26 = vld [vmem:[%s2076_s28 + $0xb40] sm:$0xff]  ;;  %v1041_v29 = vmul.f32 %v2083_v1, %v528_v24 }
 0x17b   : > { %1521 = vst [vmem:[%s2095_s21 + $0xa38] sm:$0xff] %v1009_v28  ;;  %v530_v28 = vld [vmem:[%s2076_s28 + $0xb48] sm:$0xff]  ;;  %v1042_v31 = vmul.f32 %v2083_v1, %v529_v26 }
 0x17c   : > { %1522 = vst [vmem:[%s2095_s21 + $0xa40] sm:$0xff] %v1010_v30  ;;  %v531_v30 = vld [vmem:[%s2076_s28 + $0xb50] sm:$0xff]  ;;  %v1043_v33 = vmul.f32 %v2083_v1, %v530_v28 }
 0x17d   : > { %1523 = vst [vmem:[%s2095_s21 + $0xa48] sm:$0xff] %v1011_v32  ;;  %v532_v32 = vld [vmem:[%s2076_s28 + $0xb58] sm:$0xff]  ;;  %v1044_v35 = vmul.f32 %v2083_v1, %v531_v30 }
 0x17e   : > { %1524 = vst [vmem:[%s2095_s21 + $0xa50] sm:$0xff] %v1012_v34  ;;  %v533_v34 = vld [vmem:[%s2076_s28 + $0xb60] sm:$0xff]  ;;  %v1045_v37 = vmul.f32 %v2083_v1, %v532_v32 }
 0x17f   : > { %1525 = vst [vmem:[%s2095_s21 + $0xa58] sm:$0xff] %v1013_v36  ;;  %v534_v36 = vld [vmem:[%s2076_s28 + $0xb68] sm:$0xff]  ;;  %v1046_v39 = vmul.f32 %v2083_v1, %v533_v34 }
 0x180   : > { %1526 = vst [vmem:[%s2095_s21 + $0xa60] sm:$0xff] %v1014_v38  ;;  %v535_v38 = vld [vmem:[%s2076_s28 + $0xb70] sm:$0xff]  ;;  %v1047_v41 = vmul.f32 %v2083_v1, %v534_v36 }
 0x181   : > { %1527 = vst [vmem:[%s2095_s21 + $0xa68] sm:$0xff] %v1015_v40  ;;  %v536_v40 = vld [vmem:[%s2076_s28 + $0xb78] sm:$0xff]  ;;  %v1048_v43 = vmul.f32 %v2083_v1, %v535_v38 }
 0x182   : > { %1528 = vst [vmem:[%s2095_s21 + $0xa70] sm:$0xff] %v1016_v42  ;;  %v537_v42 = vld [vmem:[%s2076_s28 + $0xb80] sm:$0xff]  ;;  %v1049_v45 = vmul.f32 %v2083_v1, %v536_v40 }
 0x183   : > { %1529 = vst [vmem:[%s2095_s21 + $0xa78] sm:$0xff] %v1017_v44  ;;  %v538_v44 = vld [vmem:[%s2076_s28 + $0xb88] sm:$0xff]  ;;  %v1050_v47 = vmul.f32 %v2083_v1, %v537_v42 }
 0x184   : > { %1530 = vst [vmem:[%s2095_s21 + $0xa80] sm:$0xff] %v1018_v46  ;;  %v539_v46 = vld [vmem:[%s2076_s28 + $0xb90] sm:$0xff]  ;;  %v1051_v49 = vmul.f32 %v2083_v1, %v538_v44 }
 0x185   : > { %1531 = vst [vmem:[%s2095_s21 + $0xa88] sm:$0xff] %v1019_v48  ;;  %v540_v48 = vld [vmem:[%s2076_s28 + $0xb98] sm:$0xff]  ;;  %v1052_v51 = vmul.f32 %v2083_v1, %v539_v46 }
 0x186   : > { %1532 = vst [vmem:[%s2095_s21 + $0xa90] sm:$0xff] %v1020_v50  ;;  %v541_v50 = vld [vmem:[%s2076_s28 + $0xba0] sm:$0xff]  ;;  %v1053_v53 = vmul.f32 %v2083_v1, %v540_v48 }
 0x187   : > { %1533 = vst [vmem:[%s2095_s21 + $0xa98] sm:$0xff] %v1021_v52  ;;  %v542_v52 = vld [vmem:[%s2076_s28 + $0xba8] sm:$0xff]  ;;  %v1054_v55 = vmul.f32 %v2083_v1, %v541_v50 }
 0x188   : > { %1534 = vst [vmem:[%s2095_s21 + $0xaa0] sm:$0xff] %v1022_v54  ;;  %v543_v54 = vld [vmem:[%s2076_s28 + $0xbb0] sm:$0xff]  ;;  %v1055_v57 = vmul.f32 %v2083_v1, %v542_v52 }
 0x189   : > { %1535 = vst [vmem:[%s2095_s21 + $0xaa8] sm:$0xff] %v1023_v56  ;;  %v544_v56 = vld [vmem:[%s2076_s28 + $0xbb8] sm:$0xff]  ;;  %v1056_v59 = vmul.f32 %v2083_v1, %v543_v54 }
 0x18a   : > { %1536 = vst [vmem:[%s2095_s21 + $0xab0] sm:$0xff] %v1024_v58  ;;  %v545_v58 = vld [vmem:[%s2076_s28 + $0xbc0] sm:$0xff]  ;;  %v1057_v61 = vmul.f32 %v2083_v1, %v544_v56 }
 0x18b   : > { %1537 = vst [vmem:[%s2095_s21 + $0xab8] sm:$0xff] %v1025_v60  ;;  %v546_v60 = vld [vmem:[%s2076_s28 + $0xbc8] sm:$0xff]  ;;  %v1058_v63 = vmul.f32 %v2083_v1, %v545_v58 }
 0x18c   : > { %1538 = vst [vmem:[%s2095_s21 + $0xac0] sm:$0xff] %v1026_v62  ;;  %v547_v62 = vld [vmem:[%s2076_s28 + $0xbd0] sm:$0xff]  ;;  %v1059_v2 = vmul.f32 %v2083_v1, %v546_v60 }
 0x18d   : > { %1539 = vst [vmem:[%s2095_s21 + $0xac8] sm:$0xff] %v1027_v0  ;;  %v548_v0 = vld [vmem:[%s2076_s28 + $0xbd8] sm:$0xff]  ;;  %v1060_v4 = vmul.f32 %v2083_v1, %v547_v62 }
 0x18e   : > { %1540 = vst [vmem:[%s2095_s21 + $0xad0] sm:$0xff] %v1028_v3  ;;  %v549_v3 = vld [vmem:[%s2076_s28 + $0xbe0] sm:$0xff]  ;;  %v1061_v6 = vmul.f32 %v2083_v1, %v548_v0 }
 0x18f   : > { %1541 = vst [vmem:[%s2095_s21 + $0xad8] sm:$0xff] %v1029_v5  ;;  %v550_v5 = vld [vmem:[%s2076_s28 + $0xbe8] sm:$0xff]  ;;  %v1062_v8 = vmul.f32 %v2083_v1, %v549_v3 }
 0x190   : > { %1542 = vst [vmem:[%s2095_s21 + $0xae0] sm:$0xff] %v1030_v7  ;;  %v551_v7 = vld [vmem:[%s2076_s28 + $0xbf0] sm:$0xff]  ;;  %v1063_v10 = vmul.f32 %v2083_v1, %v550_v5 }
 0x191   : > { %1543 = vst [vmem:[%s2095_s21 + $0xae8] sm:$0xff] %v1031_v9  ;;  %v552_v9 = vld [vmem:[%s2076_s28 + $0xbf8] sm:$0xff]  ;;  %v1064_v12 = vmul.f32 %v2083_v1, %v551_v7 }
 0x192   : > { %1544 = vst [vmem:[%s2095_s21 + $0xaf0] sm:$0xff] %v1032_v11  ;;  %v553_v11 = vld [vmem:[%s2076_s28 + $0xc00] sm:$0xff]  ;;  %v1065_v14 = vmul.f32 %v2083_v1, %v552_v9 }
 0x193   : > { %1545 = vst [vmem:[%s2095_s21 + $0xaf8] sm:$0xff] %v1033_v13  ;;  %v554_v13 = vld [vmem:[%s2076_s28 + $0xc08] sm:$0xff]  ;;  %v1066_v16 = vmul.f32 %v2083_v1, %v553_v11 }
 0x194   : > { %1546 = vst [vmem:[%s2095_s21 + $0xb00] sm:$0xff] %v1034_v15  ;;  %v555_v15 = vld [vmem:[%s2076_s28 + $0xc10] sm:$0xff]  ;;  %v1067_v18 = vmul.f32 %v2083_v1, %v554_v13 }
 0x195   : > { %1547 = vst [vmem:[%s2095_s21 + $0xb08] sm:$0xff] %v1035_v17  ;;  %v556_v17 = vld [vmem:[%s2076_s28 + $0xc18] sm:$0xff]  ;;  %v1068_v20 = vmul.f32 %v2083_v1, %v555_v15 }
 0x196   : > { %1548 = vst [vmem:[%s2095_s21 + $0xb10] sm:$0xff] %v1036_v19  ;;  %v557_v19 = vld [vmem:[%s2076_s28 + $0xc20] sm:$0xff]  ;;  %v1069_v22 = vmul.f32 %v2083_v1, %v556_v17 }
 0x197   : > { %1549 = vst [vmem:[%s2095_s21 + $0xb18] sm:$0xff] %v1037_v21  ;;  %v558_v21 = vld [vmem:[%s2076_s28 + $0xc28] sm:$0xff]  ;;  %v1070_v24 = vmul.f32 %v2083_v1, %v557_v19 }
 0x198   : > { %1550 = vst [vmem:[%s2095_s21 + $0xb20] sm:$0xff] %v1038_v23  ;;  %v559_v23 = vld [vmem:[%s2076_s28 + $0xc30] sm:$0xff]  ;;  %v1071_v26 = vmul.f32 %v2083_v1, %v558_v21 }
 0x199   : > { %1551 = vst [vmem:[%s2095_s21 + $0xb28] sm:$0xff] %v1039_v25  ;;  %v560_v25 = vld [vmem:[%s2076_s28 + $0xc38] sm:$0xff]  ;;  %v1072_v28 = vmul.f32 %v2083_v1, %v559_v23 }
 0x19a   : > { %1552 = vst [vmem:[%s2095_s21 + $0xb30] sm:$0xff] %v1040_v27  ;;  %v561_v27 = vld [vmem:[%s2076_s28 + $0xc40] sm:$0xff]  ;;  %v1073_v30 = vmul.f32 %v2083_v1, %v560_v25 }
 0x19b   : > { %1553 = vst [vmem:[%s2095_s21 + $0xb38] sm:$0xff] %v1041_v29  ;;  %v562_v29 = vld [vmem:[%s2076_s28 + $0xc48] sm:$0xff]  ;;  %v1074_v32 = vmul.f32 %v2083_v1, %v561_v27 }
 0x19c   : > { %1554 = vst [vmem:[%s2095_s21 + $0xb40] sm:$0xff] %v1042_v31  ;;  %v563_v31 = vld [vmem:[%s2076_s28 + $0xc50] sm:$0xff]  ;;  %v1075_v34 = vmul.f32 %v2083_v1, %v562_v29 }
 0x19d   : > { %1555 = vst [vmem:[%s2095_s21 + $0xb48] sm:$0xff] %v1043_v33  ;;  %v564_v33 = vld [vmem:[%s2076_s28 + $0xc58] sm:$0xff]  ;;  %v1076_v36 = vmul.f32 %v2083_v1, %v563_v31 }
 0x19e   : > { %1556 = vst [vmem:[%s2095_s21 + $0xb50] sm:$0xff] %v1044_v35  ;;  %v565_v35 = vld [vmem:[%s2076_s28 + $0xc60] sm:$0xff]  ;;  %v1077_v38 = vmul.f32 %v2083_v1, %v564_v33 }
 0x19f   : > { %1557 = vst [vmem:[%s2095_s21 + $0xb58] sm:$0xff] %v1045_v37  ;;  %v566_v37 = vld [vmem:[%s2076_s28 + $0xc68] sm:$0xff]  ;;  %v1078_v40 = vmul.f32 %v2083_v1, %v565_v35 }
 0x1a0   : > { %1558 = vst [vmem:[%s2095_s21 + $0xb60] sm:$0xff] %v1046_v39  ;;  %v567_v39 = vld [vmem:[%s2076_s28 + $0xc70] sm:$0xff]  ;;  %v1079_v42 = vmul.f32 %v2083_v1, %v566_v37 }
 0x1a1   : > { %1559 = vst [vmem:[%s2095_s21 + $0xb68] sm:$0xff] %v1047_v41  ;;  %v568_v41 = vld [vmem:[%s2076_s28 + $0xc78] sm:$0xff]  ;;  %v1080_v44 = vmul.f32 %v2083_v1, %v567_v39 }
 0x1a2   : > { %1560 = vst [vmem:[%s2095_s21 + $0xb70] sm:$0xff] %v1048_v43  ;;  %v569_v43 = vld [vmem:[%s2076_s28 + $0xc80] sm:$0xff]  ;;  %v1081_v46 = vmul.f32 %v2083_v1, %v568_v41 }
 0x1a3   : > { %1561 = vst [vmem:[%s2095_s21 + $0xb78] sm:$0xff] %v1049_v45  ;;  %v570_v45 = vld [vmem:[%s2076_s28 + $0xc88] sm:$0xff]  ;;  %v1082_v48 = vmul.f32 %v2083_v1, %v569_v43 }
 0x1a4   : > { %1562 = vst [vmem:[%s2095_s21 + $0xb80] sm:$0xff] %v1050_v47  ;;  %v571_v47 = vld [vmem:[%s2076_s28 + $0xc90] sm:$0xff]  ;;  %v1083_v50 = vmul.f32 %v2083_v1, %v570_v45 }
 0x1a5   : > { %1563 = vst [vmem:[%s2095_s21 + $0xb88] sm:$0xff] %v1051_v49  ;;  %v572_v49 = vld [vmem:[%s2076_s28 + $0xc98] sm:$0xff]  ;;  %v1084_v52 = vmul.f32 %v2083_v1, %v571_v47 }
 0x1a6   : > { %1564 = vst [vmem:[%s2095_s21 + $0xb90] sm:$0xff] %v1052_v51  ;;  %v573_v51 = vld [vmem:[%s2076_s28 + $0xca0] sm:$0xff]  ;;  %v1085_v54 = vmul.f32 %v2083_v1, %v572_v49 }
 0x1a7   : > { %1565 = vst [vmem:[%s2095_s21 + $0xb98] sm:$0xff] %v1053_v53  ;;  %v574_v53 = vld [vmem:[%s2076_s28 + $0xca8] sm:$0xff]  ;;  %v1086_v56 = vmul.f32 %v2083_v1, %v573_v51 }
 0x1a8   : > { %1566 = vst [vmem:[%s2095_s21 + $0xba0] sm:$0xff] %v1054_v55  ;;  %v575_v55 = vld [vmem:[%s2076_s28 + $0xcb0] sm:$0xff]  ;;  %v1087_v58 = vmul.f32 %v2083_v1, %v574_v53 }
 0x1a9   : > { %1567 = vst [vmem:[%s2095_s21 + $0xba8] sm:$0xff] %v1055_v57  ;;  %v576_v57 = vld [vmem:[%s2076_s28 + $0xcb8] sm:$0xff]  ;;  %v1088_v60 = vmul.f32 %v2083_v1, %v575_v55 }
 0x1aa   : > { %1568 = vst [vmem:[%s2095_s21 + $0xbb0] sm:$0xff] %v1056_v59  ;;  %v577_v59 = vld [vmem:[%s2076_s28 + $0xcc0] sm:$0xff]  ;;  %v1089_v62 = vmul.f32 %v2083_v1, %v576_v57 }
 0x1ab   : > { %1569 = vst [vmem:[%s2095_s21 + $0xbb8] sm:$0xff] %v1057_v61  ;;  %v578_v61 = vld [vmem:[%s2076_s28 + $0xcc8] sm:$0xff]  ;;  %v1090_v0 = vmul.f32 %v2083_v1, %v577_v59 }
 0x1ac   : > { %1570 = vst [vmem:[%s2095_s21 + $0xbc0] sm:$0xff] %v1058_v63  ;;  %v579_v63 = vld [vmem:[%s2076_s28 + $0xcd0] sm:$0xff]  ;;  %v1091_v3 = vmul.f32 %v2083_v1, %v578_v61 }
 0x1ad   : > { %1571 = vst [vmem:[%s2095_s21 + $0xbc8] sm:$0xff] %v1059_v2  ;;  %v580_v2 = vld [vmem:[%s2076_s28 + $0xcd8] sm:$0xff]  ;;  %v1092_v5 = vmul.f32 %v2083_v1, %v579_v63 }
 0x1ae   : > { %1572 = vst [vmem:[%s2095_s21 + $0xbd0] sm:$0xff] %v1060_v4  ;;  %v581_v4 = vld [vmem:[%s2076_s28 + $0xce0] sm:$0xff]  ;;  %v1093_v7 = vmul.f32 %v2083_v1, %v580_v2 }
 0x1af   : > { %1573 = vst [vmem:[%s2095_s21 + $0xbd8] sm:$0xff] %v1061_v6  ;;  %v582_v6 = vld [vmem:[%s2076_s28 + $0xce8] sm:$0xff]  ;;  %v1094_v9 = vmul.f32 %v2083_v1, %v581_v4 }
 0x1b0   : > { %1574 = vst [vmem:[%s2095_s21 + $0xbe0] sm:$0xff] %v1062_v8  ;;  %v583_v8 = vld [vmem:[%s2076_s28 + $0xcf0] sm:$0xff]  ;;  %v1095_v11 = vmul.f32 %v2083_v1, %v582_v6 }
 0x1b1   : > { %1575 = vst [vmem:[%s2095_s21 + $0xbe8] sm:$0xff] %v1063_v10  ;;  %v584_v10 = vld [vmem:[%s2076_s28 + $0xcf8] sm:$0xff]  ;;  %v1096_v13 = vmul.f32 %v2083_v1, %v583_v8 }
 0x1b2   : > { %1576 = vst [vmem:[%s2095_s21 + $0xbf0] sm:$0xff] %v1064_v12  ;;  %v585_v12 = vld [vmem:[%s2076_s28 + $0xd00] sm:$0xff]  ;;  %v1097_v15 = vmul.f32 %v2083_v1, %v584_v10 }
 0x1b3   : > { %1577 = vst [vmem:[%s2095_s21 + $0xbf8] sm:$0xff] %v1065_v14  ;;  %v586_v14 = vld [vmem:[%s2076_s28 + $0xd08] sm:$0xff]  ;;  %v1098_v17 = vmul.f32 %v2083_v1, %v585_v12 }
 0x1b4   : > { %1578 = vst [vmem:[%s2095_s21 + $0xc00] sm:$0xff] %v1066_v16  ;;  %v587_v16 = vld [vmem:[%s2076_s28 + $0xd10] sm:$0xff]  ;;  %v1099_v19 = vmul.f32 %v2083_v1, %v586_v14 }
 0x1b5   : > { %1579 = vst [vmem:[%s2095_s21 + $0xc08] sm:$0xff] %v1067_v18  ;;  %v588_v18 = vld [vmem:[%s2076_s28 + $0xd18] sm:$0xff]  ;;  %v1100_v21 = vmul.f32 %v2083_v1, %v587_v16 }
 0x1b6   : > { %1580 = vst [vmem:[%s2095_s21 + $0xc10] sm:$0xff] %v1068_v20  ;;  %v589_v20 = vld [vmem:[%s2076_s28 + $0xd20] sm:$0xff]  ;;  %v1101_v23 = vmul.f32 %v2083_v1, %v588_v18 }
 0x1b7   : > { %1581 = vst [vmem:[%s2095_s21 + $0xc18] sm:$0xff] %v1069_v22  ;;  %v590_v22 = vld [vmem:[%s2076_s28 + $0xd28] sm:$0xff]  ;;  %v1102_v25 = vmul.f32 %v2083_v1, %v589_v20 }
 0x1b8   : > { %1582 = vst [vmem:[%s2095_s21 + $0xc20] sm:$0xff] %v1070_v24  ;;  %v591_v24 = vld [vmem:[%s2076_s28 + $0xd30] sm:$0xff]  ;;  %v1103_v27 = vmul.f32 %v2083_v1, %v590_v22 }
 0x1b9   : > { %1583 = vst [vmem:[%s2095_s21 + $0xc28] sm:$0xff] %v1071_v26  ;;  %v592_v26 = vld [vmem:[%s2076_s28 + $0xd38] sm:$0xff]  ;;  %v1104_v29 = vmul.f32 %v2083_v1, %v591_v24 }
 0x1ba   : > { %1584 = vst [vmem:[%s2095_s21 + $0xc30] sm:$0xff] %v1072_v28  ;;  %v593_v28 = vld [vmem:[%s2076_s28 + $0xd40] sm:$0xff]  ;;  %v1105_v31 = vmul.f32 %v2083_v1, %v592_v26 }
 0x1bb   : > { %1585 = vst [vmem:[%s2095_s21 + $0xc38] sm:$0xff] %v1073_v30  ;;  %v594_v30 = vld [vmem:[%s2076_s28 + $0xd48] sm:$0xff]  ;;  %v1106_v33 = vmul.f32 %v2083_v1, %v593_v28 }
 0x1bc   : > { %1586 = vst [vmem:[%s2095_s21 + $0xc40] sm:$0xff] %v1074_v32  ;;  %v595_v32 = vld [vmem:[%s2076_s28 + $0xd50] sm:$0xff]  ;;  %v1107_v35 = vmul.f32 %v2083_v1, %v594_v30 }
 0x1bd   : > { %1587 = vst [vmem:[%s2095_s21 + $0xc48] sm:$0xff] %v1075_v34  ;;  %v596_v34 = vld [vmem:[%s2076_s28 + $0xd58] sm:$0xff]  ;;  %v1108_v37 = vmul.f32 %v2083_v1, %v595_v32 }
 0x1be   : > { %1588 = vst [vmem:[%s2095_s21 + $0xc50] sm:$0xff] %v1076_v36  ;;  %v597_v36 = vld [vmem:[%s2076_s28 + $0xd60] sm:$0xff]  ;;  %v1109_v39 = vmul.f32 %v2083_v1, %v596_v34 }
 0x1bf   : > { %1589 = vst [vmem:[%s2095_s21 + $0xc58] sm:$0xff] %v1077_v38  ;;  %v598_v38 = vld [vmem:[%s2076_s28 + $0xd68] sm:$0xff]  ;;  %v1110_v41 = vmul.f32 %v2083_v1, %v597_v36 }
 0x1c0   : > { %1590 = vst [vmem:[%s2095_s21 + $0xc60] sm:$0xff] %v1078_v40  ;;  %v599_v40 = vld [vmem:[%s2076_s28 + $0xd70] sm:$0xff]  ;;  %v1111_v43 = vmul.f32 %v2083_v1, %v598_v38 }
 0x1c1   : > { %1591 = vst [vmem:[%s2095_s21 + $0xc68] sm:$0xff] %v1079_v42  ;;  %v600_v42 = vld [vmem:[%s2076_s28 + $0xd78] sm:$0xff]  ;;  %v1112_v45 = vmul.f32 %v2083_v1, %v599_v40 }
 0x1c2   : > { %1592 = vst [vmem:[%s2095_s21 + $0xc70] sm:$0xff] %v1080_v44  ;;  %v601_v44 = vld [vmem:[%s2076_s28 + $0xd80] sm:$0xff]  ;;  %v1113_v47 = vmul.f32 %v2083_v1, %v600_v42 }
 0x1c3   : > { %1593 = vst [vmem:[%s2095_s21 + $0xc78] sm:$0xff] %v1081_v46  ;;  %v602_v46 = vld [vmem:[%s2076_s28 + $0xd88] sm:$0xff]  ;;  %v1114_v49 = vmul.f32 %v2083_v1, %v601_v44 }
 0x1c4   : > { %1594 = vst [vmem:[%s2095_s21 + $0xc80] sm:$0xff] %v1082_v48  ;;  %v603_v48 = vld [vmem:[%s2076_s28 + $0xd90] sm:$0xff]  ;;  %v1115_v51 = vmul.f32 %v2083_v1, %v602_v46 }
 0x1c5   : > { %1595 = vst [vmem:[%s2095_s21 + $0xc88] sm:$0xff] %v1083_v50  ;;  %v604_v50 = vld [vmem:[%s2076_s28 + $0xd98] sm:$0xff]  ;;  %v1116_v53 = vmul.f32 %v2083_v1, %v603_v48 }
 0x1c6   : > { %1596 = vst [vmem:[%s2095_s21 + $0xc90] sm:$0xff] %v1084_v52  ;;  %v605_v52 = vld [vmem:[%s2076_s28 + $0xda0] sm:$0xff]  ;;  %v1117_v55 = vmul.f32 %v2083_v1, %v604_v50 }
 0x1c7   : > { %1597 = vst [vmem:[%s2095_s21 + $0xc98] sm:$0xff] %v1085_v54  ;;  %v606_v54 = vld [vmem:[%s2076_s28 + $0xda8] sm:$0xff]  ;;  %v1118_v57 = vmul.f32 %v2083_v1, %v605_v52 }
 0x1c8   : > { %1598 = vst [vmem:[%s2095_s21 + $0xca0] sm:$0xff] %v1086_v56  ;;  %v607_v56 = vld [vmem:[%s2076_s28 + $0xdb0] sm:$0xff]  ;;  %v1119_v59 = vmul.f32 %v2083_v1, %v606_v54 }
 0x1c9   : > { %1599 = vst [vmem:[%s2095_s21 + $0xca8] sm:$0xff] %v1087_v58  ;;  %v608_v58 = vld [vmem:[%s2076_s28 + $0xdb8] sm:$0xff]  ;;  %v1120_v61 = vmul.f32 %v2083_v1, %v607_v56 }
 0x1ca   : > { %1600 = vst [vmem:[%s2095_s21 + $0xcb0] sm:$0xff] %v1088_v60  ;;  %v609_v60 = vld [vmem:[%s2076_s28 + $0xdc0] sm:$0xff]  ;;  %v1121_v63 = vmul.f32 %v2083_v1, %v608_v58 }
 0x1cb   : > { %1601 = vst [vmem:[%s2095_s21 + $0xcb8] sm:$0xff] %v1089_v62  ;;  %v610_v62 = vld [vmem:[%s2076_s28 + $0xdc8] sm:$0xff]  ;;  %v1122_v2 = vmul.f32 %v2083_v1, %v609_v60 }
 0x1cc   : > { %1602 = vst [vmem:[%s2095_s21 + $0xcc0] sm:$0xff] %v1090_v0  ;;  %v611_v0 = vld [vmem:[%s2076_s28 + $0xdd0] sm:$0xff]  ;;  %v1123_v4 = vmul.f32 %v2083_v1, %v610_v62 }
 0x1cd   : > { %1603 = vst [vmem:[%s2095_s21 + $0xcc8] sm:$0xff] %v1091_v3  ;;  %v612_v3 = vld [vmem:[%s2076_s28 + $0xdd8] sm:$0xff]  ;;  %v1124_v6 = vmul.f32 %v2083_v1, %v611_v0 }
 0x1ce   : > { %1604 = vst [vmem:[%s2095_s21 + $0xcd0] sm:$0xff] %v1092_v5  ;;  %v613_v5 = vld [vmem:[%s2076_s28 + $0xde0] sm:$0xff]  ;;  %v1125_v8 = vmul.f32 %v2083_v1, %v612_v3 }
 0x1cf   : > { %1605 = vst [vmem:[%s2095_s21 + $0xcd8] sm:$0xff] %v1093_v7  ;;  %v614_v7 = vld [vmem:[%s2076_s28 + $0xde8] sm:$0xff]  ;;  %v1126_v10 = vmul.f32 %v2083_v1, %v613_v5 }
 0x1d0   : > { %1606 = vst [vmem:[%s2095_s21 + $0xce0] sm:$0xff] %v1094_v9  ;;  %v615_v9 = vld [vmem:[%s2076_s28 + $0xdf0] sm:$0xff]  ;;  %v1127_v12 = vmul.f32 %v2083_v1, %v614_v7 }
 0x1d1   : > { %1607 = vst [vmem:[%s2095_s21 + $0xce8] sm:$0xff] %v1095_v11  ;;  %v616_v11 = vld [vmem:[%s2076_s28 + $0xdf8] sm:$0xff]  ;;  %v1128_v14 = vmul.f32 %v2083_v1, %v615_v9 }
 0x1d2   : > { %1608 = vst [vmem:[%s2095_s21 + $0xcf0] sm:$0xff] %v1096_v13  ;;  %v617_v13 = vld [vmem:[%s2076_s28 + $0xe00] sm:$0xff]  ;;  %v1129_v16 = vmul.f32 %v2083_v1, %v616_v11 }
 0x1d3   : > { %1609 = vst [vmem:[%s2095_s21 + $0xcf8] sm:$0xff] %v1097_v15  ;;  %v618_v15 = vld [vmem:[%s2076_s28 + $0xe08] sm:$0xff]  ;;  %v1130_v18 = vmul.f32 %v2083_v1, %v617_v13 }
 0x1d4   : > { %1610 = vst [vmem:[%s2095_s21 + $0xd00] sm:$0xff] %v1098_v17  ;;  %v619_v17 = vld [vmem:[%s2076_s28 + $0xe10] sm:$0xff]  ;;  %v1131_v20 = vmul.f32 %v2083_v1, %v618_v15 }
 0x1d5   : > { %1611 = vst [vmem:[%s2095_s21 + $0xd08] sm:$0xff] %v1099_v19  ;;  %v620_v19 = vld [vmem:[%s2076_s28 + $0xe18] sm:$0xff]  ;;  %v1132_v22 = vmul.f32 %v2083_v1, %v619_v17 }
 0x1d6   : > { %1612 = vst [vmem:[%s2095_s21 + $0xd10] sm:$0xff] %v1100_v21  ;;  %v621_v21 = vld [vmem:[%s2076_s28 + $0xe20] sm:$0xff]  ;;  %v1133_v24 = vmul.f32 %v2083_v1, %v620_v19 }
 0x1d7   : > { %1613 = vst [vmem:[%s2095_s21 + $0xd18] sm:$0xff] %v1101_v23  ;;  %v622_v23 = vld [vmem:[%s2076_s28 + $0xe28] sm:$0xff]  ;;  %v1134_v26 = vmul.f32 %v2083_v1, %v621_v21 }
 0x1d8   : > { %1614 = vst [vmem:[%s2095_s21 + $0xd20] sm:$0xff] %v1102_v25  ;;  %v623_v25 = vld [vmem:[%s2076_s28 + $0xe30] sm:$0xff]  ;;  %v1135_v28 = vmul.f32 %v2083_v1, %v622_v23 }
 0x1d9   : > { %1615 = vst [vmem:[%s2095_s21 + $0xd28] sm:$0xff] %v1103_v27  ;;  %v624_v27 = vld [vmem:[%s2076_s28 + $0xe38] sm:$0xff]  ;;  %v1136_v30 = vmul.f32 %v2083_v1, %v623_v25 }
 0x1da   : > { %1616 = vst [vmem:[%s2095_s21 + $0xd30] sm:$0xff] %v1104_v29  ;;  %v625_v29 = vld [vmem:[%s2076_s28 + $0xe40] sm:$0xff]  ;;  %v1137_v32 = vmul.f32 %v2083_v1, %v624_v27 }
 0x1db   : > { %1617 = vst [vmem:[%s2095_s21 + $0xd38] sm:$0xff] %v1105_v31  ;;  %v626_v31 = vld [vmem:[%s2076_s28 + $0xe48] sm:$0xff]  ;;  %v1138_v34 = vmul.f32 %v2083_v1, %v625_v29 }
 0x1dc   : > { %1618 = vst [vmem:[%s2095_s21 + $0xd40] sm:$0xff] %v1106_v33  ;;  %v627_v33 = vld [vmem:[%s2076_s28 + $0xe50] sm:$0xff]  ;;  %v1139_v36 = vmul.f32 %v2083_v1, %v626_v31 }
 0x1dd   : > { %1619 = vst [vmem:[%s2095_s21 + $0xd48] sm:$0xff] %v1107_v35  ;;  %v628_v35 = vld [vmem:[%s2076_s28 + $0xe58] sm:$0xff]  ;;  %v1140_v38 = vmul.f32 %v2083_v1, %v627_v33 }
 0x1de   : > { %1620 = vst [vmem:[%s2095_s21 + $0xd50] sm:$0xff] %v1108_v37  ;;  %v629_v37 = vld [vmem:[%s2076_s28 + $0xe60] sm:$0xff]  ;;  %v1141_v40 = vmul.f32 %v2083_v1, %v628_v35 }
 0x1df   : > { %1621 = vst [vmem:[%s2095_s21 + $0xd58] sm:$0xff] %v1109_v39  ;;  %v630_v39 = vld [vmem:[%s2076_s28 + $0xe68] sm:$0xff]  ;;  %v1142_v42 = vmul.f32 %v2083_v1, %v629_v37 }
 0x1e0   : > { %1622 = vst [vmem:[%s2095_s21 + $0xd60] sm:$0xff] %v1110_v41  ;;  %v631_v41 = vld [vmem:[%s2076_s28 + $0xe70] sm:$0xff]  ;;  %v1143_v44 = vmul.f32 %v2083_v1, %v630_v39 }
 0x1e1   : > { %1623 = vst [vmem:[%s2095_s21 + $0xd68] sm:$0xff] %v1111_v43  ;;  %v632_v43 = vld [vmem:[%s2076_s28 + $0xe78] sm:$0xff]  ;;  %v1144_v46 = vmul.f32 %v2083_v1, %v631_v41 }
 0x1e2   : > { %1624 = vst [vmem:[%s2095_s21 + $0xd70] sm:$0xff] %v1112_v45  ;;  %v633_v45 = vld [vmem:[%s2076_s28 + $0xe80] sm:$0xff]  ;;  %v1145_v48 = vmul.f32 %v2083_v1, %v632_v43 }
 0x1e3   : > { %1625 = vst [vmem:[%s2095_s21 + $0xd78] sm:$0xff] %v1113_v47  ;;  %v634_v47 = vld [vmem:[%s2076_s28 + $0xe88] sm:$0xff]  ;;  %v1146_v50 = vmul.f32 %v2083_v1, %v633_v45 }
 0x1e4   : > { %1626 = vst [vmem:[%s2095_s21 + $0xd80] sm:$0xff] %v1114_v49  ;;  %v635_v49 = vld [vmem:[%s2076_s28 + $0xe90] sm:$0xff]  ;;  %v1147_v52 = vmul.f32 %v2083_v1, %v634_v47 }
 0x1e5   : > { %1627 = vst [vmem:[%s2095_s21 + $0xd88] sm:$0xff] %v1115_v51  ;;  %v636_v51 = vld [vmem:[%s2076_s28 + $0xe98] sm:$0xff]  ;;  %v1148_v54 = vmul.f32 %v2083_v1, %v635_v49 }
 0x1e6   : > { %1628 = vst [vmem:[%s2095_s21 + $0xd90] sm:$0xff] %v1116_v53  ;;  %v637_v53 = vld [vmem:[%s2076_s28 + $0xea0] sm:$0xff]  ;;  %v1149_v56 = vmul.f32 %v2083_v1, %v636_v51 }
 0x1e7   : > { %1629 = vst [vmem:[%s2095_s21 + $0xd98] sm:$0xff] %v1117_v55  ;;  %v638_v55 = vld [vmem:[%s2076_s28 + $0xea8] sm:$0xff]  ;;  %v1150_v58 = vmul.f32 %v2083_v1, %v637_v53 }
 0x1e8   : > { %1630 = vst [vmem:[%s2095_s21 + $0xda0] sm:$0xff] %v1118_v57  ;;  %v639_v57 = vld [vmem:[%s2076_s28 + $0xeb0] sm:$0xff]  ;;  %v1151_v60 = vmul.f32 %v2083_v1, %v638_v55 }
 0x1e9   : > { %1631 = vst [vmem:[%s2095_s21 + $0xda8] sm:$0xff] %v1119_v59  ;;  %v640_v59 = vld [vmem:[%s2076_s28 + $0xeb8] sm:$0xff]  ;;  %v1152_v62 = vmul.f32 %v2083_v1, %v639_v57 }
 0x1ea   : > { %1632 = vst [vmem:[%s2095_s21 + $0xdb0] sm:$0xff] %v1120_v61  ;;  %v641_v61 = vld [vmem:[%s2076_s28 + $0xec0] sm:$0xff]  ;;  %v1153_v0 = vmul.f32 %v2083_v1, %v640_v59 }
 0x1eb   : > { %1633 = vst [vmem:[%s2095_s21 + $0xdb8] sm:$0xff] %v1121_v63  ;;  %v642_v63 = vld [vmem:[%s2076_s28 + $0xec8] sm:$0xff]  ;;  %v1154_v3 = vmul.f32 %v2083_v1, %v641_v61 }
 0x1ec   : > { %1634 = vst [vmem:[%s2095_s21 + $0xdc0] sm:$0xff] %v1122_v2  ;;  %v643_v2 = vld [vmem:[%s2076_s28 + $0xed0] sm:$0xff]  ;;  %v1155_v5 = vmul.f32 %v2083_v1, %v642_v63 }
 0x1ed   : > { %1635 = vst [vmem:[%s2095_s21 + $0xdc8] sm:$0xff] %v1123_v4  ;;  %v644_v4 = vld [vmem:[%s2076_s28 + $0xed8] sm:$0xff]  ;;  %v1156_v7 = vmul.f32 %v2083_v1, %v643_v2 }
 0x1ee   : > { %1636 = vst [vmem:[%s2095_s21 + $0xdd0] sm:$0xff] %v1124_v6  ;;  %v645_v6 = vld [vmem:[%s2076_s28 + $0xee0] sm:$0xff]  ;;  %v1157_v9 = vmul.f32 %v2083_v1, %v644_v4 }
 0x1ef   : > { %1637 = vst [vmem:[%s2095_s21 + $0xdd8] sm:$0xff] %v1125_v8  ;;  %v646_v8 = vld [vmem:[%s2076_s28 + $0xee8] sm:$0xff]  ;;  %v1158_v11 = vmul.f32 %v2083_v1, %v645_v6 }
 0x1f0   : > { %1638 = vst [vmem:[%s2095_s21 + $0xde0] sm:$0xff] %v1126_v10  ;;  %v647_v10 = vld [vmem:[%s2076_s28 + $0xef0] sm:$0xff]  ;;  %v1159_v13 = vmul.f32 %v2083_v1, %v646_v8 }
 0x1f1   : > { %1639 = vst [vmem:[%s2095_s21 + $0xde8] sm:$0xff] %v1127_v12  ;;  %v648_v12 = vld [vmem:[%s2076_s28 + $0xef8] sm:$0xff]  ;;  %v1160_v15 = vmul.f32 %v2083_v1, %v647_v10 }
 0x1f2   : > { %1640 = vst [vmem:[%s2095_s21 + $0xdf0] sm:$0xff] %v1128_v14  ;;  %v649_v14 = vld [vmem:[%s2076_s28 + $0xf00] sm:$0xff]  ;;  %v1161_v17 = vmul.f32 %v2083_v1, %v648_v12 }
 0x1f3   : > { %1641 = vst [vmem:[%s2095_s21 + $0xdf8] sm:$0xff] %v1129_v16  ;;  %v650_v16 = vld [vmem:[%s2076_s28 + $0xf08] sm:$0xff]  ;;  %v1162_v19 = vmul.f32 %v2083_v1, %v649_v14 }
 0x1f4   : > { %1642 = vst [vmem:[%s2095_s21 + $0xe00] sm:$0xff] %v1130_v18  ;;  %v651_v18 = vld [vmem:[%s2076_s28 + $0xf10] sm:$0xff]  ;;  %v1163_v21 = vmul.f32 %v2083_v1, %v650_v16 }
 0x1f5   : > { %1643 = vst [vmem:[%s2095_s21 + $0xe08] sm:$0xff] %v1131_v20  ;;  %v652_v20 = vld [vmem:[%s2076_s28 + $0xf18] sm:$0xff]  ;;  %v1164_v23 = vmul.f32 %v2083_v1, %v651_v18 }
 0x1f6   : > { %1644 = vst [vmem:[%s2095_s21 + $0xe10] sm:$0xff] %v1132_v22  ;;  %v653_v22 = vld [vmem:[%s2076_s28 + $0xf20] sm:$0xff]  ;;  %v1165_v25 = vmul.f32 %v2083_v1, %v652_v20 }
 0x1f7   : > { %1645 = vst [vmem:[%s2095_s21 + $0xe18] sm:$0xff] %v1133_v24  ;;  %v654_v24 = vld [vmem:[%s2076_s28 + $0xf28] sm:$0xff]  ;;  %v1166_v27 = vmul.f32 %v2083_v1, %v653_v22 }
 0x1f8   : > { %1646 = vst [vmem:[%s2095_s21 + $0xe20] sm:$0xff] %v1134_v26  ;;  %v655_v26 = vld [vmem:[%s2076_s28 + $0xf30] sm:$0xff]  ;;  %v1167_v29 = vmul.f32 %v2083_v1, %v654_v24 }
 0x1f9   : > { %1647 = vst [vmem:[%s2095_s21 + $0xe28] sm:$0xff] %v1135_v28  ;;  %v656_v28 = vld [vmem:[%s2076_s28 + $0xf38] sm:$0xff]  ;;  %v1168_v31 = vmul.f32 %v2083_v1, %v655_v26 }
 0x1fa   : > { %1648 = vst [vmem:[%s2095_s21 + $0xe30] sm:$0xff] %v1136_v30  ;;  %v657_v30 = vld [vmem:[%s2076_s28 + $0xf40] sm:$0xff]  ;;  %v1169_v33 = vmul.f32 %v2083_v1, %v656_v28 }
 0x1fb   : > { %1649 = vst [vmem:[%s2095_s21 + $0xe38] sm:$0xff] %v1137_v32  ;;  %v658_v32 = vld [vmem:[%s2076_s28 + $0xf48] sm:$0xff]  ;;  %v1170_v35 = vmul.f32 %v2083_v1, %v657_v30 }
 0x1fc   : > { %1650 = vst [vmem:[%s2095_s21 + $0xe40] sm:$0xff] %v1138_v34  ;;  %v659_v34 = vld [vmem:[%s2076_s28 + $0xf50] sm:$0xff]  ;;  %v1171_v37 = vmul.f32 %v2083_v1, %v658_v32 }
 0x1fd   : > { %1651 = vst [vmem:[%s2095_s21 + $0xe48] sm:$0xff] %v1139_v36  ;;  %v660_v36 = vld [vmem:[%s2076_s28 + $0xf58] sm:$0xff]  ;;  %v1172_v39 = vmul.f32 %v2083_v1, %v659_v34 }
 0x1fe   : > { %1652 = vst [vmem:[%s2095_s21 + $0xe50] sm:$0xff] %v1140_v38  ;;  %v661_v38 = vld [vmem:[%s2076_s28 + $0xf60] sm:$0xff]  ;;  %v1173_v41 = vmul.f32 %v2083_v1, %v660_v36 }
 0x1ff   : > { %1653 = vst [vmem:[%s2095_s21 + $0xe58] sm:$0xff] %v1141_v40  ;;  %v662_v40 = vld [vmem:[%s2076_s28 + $0xf68] sm:$0xff]  ;;  %v1174_v43 = vmul.f32 %v2083_v1, %v661_v38 }
 0x200   : > { %1654 = vst [vmem:[%s2095_s21 + $0xe60] sm:$0xff] %v1142_v42  ;;  %v663_v42 = vld [vmem:[%s2076_s28 + $0xf70] sm:$0xff]  ;;  %v1175_v45 = vmul.f32 %v2083_v1, %v662_v40 }
 0x201   : > { %1655 = vst [vmem:[%s2095_s21 + $0xe68] sm:$0xff] %v1143_v44  ;;  %v664_v44 = vld [vmem:[%s2076_s28 + $0xf78] sm:$0xff]  ;;  %v1176_v47 = vmul.f32 %v2083_v1, %v663_v42 }
 0x202   : > { %1656 = vst [vmem:[%s2095_s21 + $0xe70] sm:$0xff] %v1144_v46  ;;  %v665_v46 = vld [vmem:[%s2076_s28 + $0xf80] sm:$0xff]  ;;  %v1177_v49 = vmul.f32 %v2083_v1, %v664_v44 }
 0x203   : > { %1657 = vst [vmem:[%s2095_s21 + $0xe78] sm:$0xff] %v1145_v48  ;;  %v666_v48 = vld [vmem:[%s2076_s28 + $0xf88] sm:$0xff]  ;;  %v1178_v51 = vmul.f32 %v2083_v1, %v665_v46 }
 0x204   : > { %1658 = vst [vmem:[%s2095_s21 + $0xe80] sm:$0xff] %v1146_v50  ;;  %v667_v50 = vld [vmem:[%s2076_s28 + $0xf90] sm:$0xff]  ;;  %v1179_v53 = vmul.f32 %v2083_v1, %v666_v48 }
 0x205   : > { %1659 = vst [vmem:[%s2095_s21 + $0xe88] sm:$0xff] %v1147_v52  ;;  %v668_v52 = vld [vmem:[%s2076_s28 + $0xf98] sm:$0xff]  ;;  %v1180_v55 = vmul.f32 %v2083_v1, %v667_v50 }
 0x206   : > { %1660 = vst [vmem:[%s2095_s21 + $0xe90] sm:$0xff] %v1148_v54  ;;  %v669_v54 = vld [vmem:[%s2076_s28 + $0xfa0] sm:$0xff]  ;;  %v1181_v57 = vmul.f32 %v2083_v1, %v668_v52 }
 0x207   : > { %1661 = vst [vmem:[%s2095_s21 + $0xe98] sm:$0xff] %v1149_v56  ;;  %v670_v56 = vld [vmem:[%s2076_s28 + $0xfa8] sm:$0xff]  ;;  %v1182_v59 = vmul.f32 %v2083_v1, %v669_v54 }
 0x208   : > { %1662 = vst [vmem:[%s2095_s21 + $0xea0] sm:$0xff] %v1150_v58  ;;  %v671_v58 = vld [vmem:[%s2076_s28 + $0xfb0] sm:$0xff]  ;;  %v1183_v61 = vmul.f32 %v2083_v1, %v670_v56 }
 0x209   : > { %1663 = vst [vmem:[%s2095_s21 + $0xea8] sm:$0xff] %v1151_v60  ;;  %v672_v60 = vld [vmem:[%s2076_s28 + $0xfb8] sm:$0xff]  ;;  %v1184_v63 = vmul.f32 %v2083_v1, %v671_v58 }
 0x20a   : > { %1664 = vst [vmem:[%s2095_s21 + $0xeb0] sm:$0xff] %v1152_v62  ;;  %v673_v62 = vld [vmem:[%s2076_s28 + $0xfc0] sm:$0xff]  ;;  %v1185_v2 = vmul.f32 %v2083_v1, %v672_v60 }
 0x20b   : > { %1665 = vst [vmem:[%s2095_s21 + $0xeb8] sm:$0xff] %v1153_v0  ;;  %v674_v0 = vld [vmem:[%s2076_s28 + $0xfc8] sm:$0xff]  ;;  %v1186_v4 = vmul.f32 %v2083_v1, %v673_v62 }
 0x20c   : > { %1666 = vst [vmem:[%s2095_s21 + $0xec0] sm:$0xff] %v1154_v3  ;;  %v675_v3 = vld [vmem:[%s2076_s28 + $0xfd0] sm:$0xff]  ;;  %v1187_v6 = vmul.f32 %v2083_v1, %v674_v0 }
 0x20d   : > { %1667 = vst [vmem:[%s2095_s21 + $0xec8] sm:$0xff] %v1155_v5  ;;  %v676_v5 = vld [vmem:[%s2076_s28 + $0xfd8] sm:$0xff]  ;;  %v1188_v8 = vmul.f32 %v2083_v1, %v675_v3 }
 0x20e   : > { %1668 = vst [vmem:[%s2095_s21 + $0xed0] sm:$0xff] %v1156_v7  ;;  %v677_v7 = vld [vmem:[%s2076_s28 + $0xfe0] sm:$0xff]  ;;  %v1189_v10 = vmul.f32 %v2083_v1, %v676_v5 }
 0x20f   : > { %1669 = vst [vmem:[%s2095_s21 + $0xed8] sm:$0xff] %v1157_v9  ;;  %v678_v9 = vld [vmem:[%s2076_s28 + $0xfe8] sm:$0xff]  ;;  %v1190_v12 = vmul.f32 %v2083_v1, %v677_v7 }
 0x210   : > { %1670 = vst [vmem:[%s2095_s21 + $0xee0] sm:$0xff] %v1158_v11  ;;  %v679_v11 = vld [vmem:[%s2076_s28 + $0xff0] sm:$0xff]  ;;  %v1191_v14 = vmul.f32 %v2083_v1, %v678_v9 }
 0x211   : > { %1671 = vst [vmem:[%s2095_s21 + $0xee8] sm:$0xff] %v1159_v13  ;;  %v680_v13 = vld [vmem:[%s2076_s28 + $0xff8] sm:$0xff] }
 0x212   : > { %1672 = vst [vmem:[%s2095_s21 + $0xef0] sm:$0xff] %v1160_v15  ;;  %v1192_v15 = vmul.f32 %v2083_v1, %v679_v11  ;;  %v1193_v16 = vmul.f32 %v2083_v1, %v680_v13 }
 0x213   : > { %1673 = vst [vmem:[%s2095_s21 + $0xef8] sm:$0xff] %v1161_v17 }
 0x214   : > { %1674 = vst [vmem:[%s2095_s21 + $0xf00] sm:$0xff] %v1162_v19 }
 0x215   : > { %1675 = vst [vmem:[%s2095_s21 + $0xf08] sm:$0xff] %v1163_v21 }
 0x216   : > { %1676 = vst [vmem:[%s2095_s21 + $0xf10] sm:$0xff] %v1164_v23 }
 0x217   : > { %1677 = vst [vmem:[%s2095_s21 + $0xf18] sm:$0xff] %v1165_v25 }
 0x218   : > { %1678 = vst [vmem:[%s2095_s21 + $0xf20] sm:$0xff] %v1166_v27 }
 0x219   : > { %1679 = vst [vmem:[%s2095_s21 + $0xf28] sm:$0xff] %v1167_v29 }
 0x21a   : > { %1680 = vst [vmem:[%s2095_s21 + $0xf30] sm:$0xff] %v1168_v31 }
 0x21b   : > { %1681 = vst [vmem:[%s2095_s21 + $0xf38] sm:$0xff] %v1169_v33 }
 0x21c   : > { %1682 = vst [vmem:[%s2095_s21 + $0xf40] sm:$0xff] %v1170_v35 }
 0x21d   : > { %1683 = vst [vmem:[%s2095_s21 + $0xf48] sm:$0xff] %v1171_v37 }
 0x21e   : > { %1684 = vst [vmem:[%s2095_s21 + $0xf50] sm:$0xff] %v1172_v39 }
 0x21f   : > { %1685 = vst [vmem:[%s2095_s21 + $0xf58] sm:$0xff] %v1173_v41 }
 0x220   : > { %1686 = vst [vmem:[%s2095_s21 + $0xf60] sm:$0xff] %v1174_v43 }
 0x221   : > { %1687 = vst [vmem:[%s2095_s21 + $0xf68] sm:$0xff] %v1175_v45 }
 0x222   : > { %1688 = vst [vmem:[%s2095_s21 + $0xf70] sm:$0xff] %v1176_v47 }
 0x223   : > { %1689 = vst [vmem:[%s2095_s21 + $0xf78] sm:$0xff] %v1177_v49 }
 0x224   : > { %1690 = vst [vmem:[%s2095_s21 + $0xf80] sm:$0xff] %v1178_v51 }
 0x225   : > { %1691 = vst [vmem:[%s2095_s21 + $0xf88] sm:$0xff] %v1179_v53 }
 0x226   : > { %1692 = vst [vmem:[%s2095_s21 + $0xf90] sm:$0xff] %v1180_v55 }
 0x227   : > { %1693 = vst [vmem:[%s2095_s21 + $0xf98] sm:$0xff] %v1181_v57 }
 0x228   : > { %1694 = vst [vmem:[%s2095_s21 + $0xfa0] sm:$0xff] %v1182_v59 }
 0x229   : > { %1695 = vst [vmem:[%s2095_s21 + $0xfa8] sm:$0xff] %v1183_v61 }
 0x22a   : > { %1696 = vst [vmem:[%s2095_s21 + $0xfb0] sm:$0xff] %v1184_v63 }
 0x22b   : > { %1697 = vst [vmem:[%s2095_s21 + $0xfb8] sm:$0xff] %v1185_v2 }
 0x22c   : > { %1698 = vst [vmem:[%s2095_s21 + $0xfc0] sm:$0xff] %v1186_v4 }
 0x22d   : > { %1699 = vst [vmem:[%s2095_s21 + $0xfc8] sm:$0xff] %v1187_v6 }
 0x22e   : > { %1700 = vst [vmem:[%s2095_s21 + $0xfd0] sm:$0xff] %v1188_v8 }
 0x22f   : > { %1701 = vst [vmem:[%s2095_s21 + $0xfd8] sm:$0xff] %v1189_v10 }
 0x230   : > { %1702 = vst [vmem:[%s2095_s21 + $0xfe0] sm:$0xff] %v1190_v12 }
 0x231   : > { %1703 = vst [vmem:[%s2095_s21 + $0xfe8] sm:$0xff] %v1191_v14 }
 0x232   : > { %1704 = vst [vmem:[%s2095_s21 + $0xff0] sm:$0xff] %v1192_v15 }
 0x233   : > { %1705 = vst [vmem:[%s2095_s21 + $0xff8] sm:$0xff] %v1193_v16 }
 0x234   : > { %1923 = shalt.err (!%p1920_p4)
}
 0x235   : > { %s1966_s24 = smov 1024   ;;  %s1967_s25 = smov 64  }
 0x236   : > { %1818 = dma.vmem_to_hbm [thread:$0]  (%p2036_p11), %s1721_s5, 65536, %s1723_s6, %s1707_s7, %s1966_s24, %s1966_s24, %s1967_s25  }
 0x237 PF: > { %s1737_s26 = sand.u32 1, %s1950_s11   ;;  %p3664_p7 = scmp.ge.s32.totalorder %s1962_s14, 2 }
 0x238   : > { %s1738_s27 = scalar_lea.sflag [#allocation5], %s1737_s26 }
 0x239   : > { %p1825_p5 = pnand %p3664_p7, %p2040_p12 }
 0x23b   : > { %p1826_p8 = pneg %p1825_p5 }
 0x23d   : > { %1945 = dma.done.wait (%p1826_p8), %s1738_s27, 65536  }
 0x23e   : > { %1947 = vsyncadd (%p1826_p8), %s1738_s27, 4294901760  ;;  %p16_p10 = scmp.ge.s32.totalorder %s2011_s16, 4   ;;  %s3665_s11 = smov %s1954_s12 }
 0x23f   : > { %s3666_s12 = smov %s1958_s13  ;;  %s3667_s13 = smov %s2023_s19 }
 0x240   : > { %s3668_s14 = smov %s2011_s16  ;;  %18 = sbr.rel (!%p16_p10) target bundleno = 7 (0x7), region = 73 }
 0x245   :  { %1744 = vsyncpa [#allocation4], 1 }
 0x246   :  { %1746 = vsyncpa [#allocation4 + $0x1], 1 }
 0x247   :  { %1747 = vsyncpa [#allocation5], 1 }
 0x248   :  { %1749 = vsyncpa [#allocation5 + $0x1], 1 }

</bundles_post_ra>
